<compile_context>
chip_gen: v7x
topology: tpu7x:2x2x1
jax: 0.10.0
libtpu: 0.0.40
codegen_flags: <defaults>
</compile_context>

<pallas_src>
import math

import jax
import jax.numpy as jnp
from jax import lax
from jax.experimental import pallas as pl
from jax.experimental.pallas import tpu as pltpu

# ---- tiny synthetic "BERT" config ----
VOCAB = 50
SEQ = 8
HIDDEN = 128
NUM_HEADS = 4
HEAD_DIM = HIDDEN // NUM_HEADS
INTERMEDIATE = 256
NUM_LAYERS = 2
LN_EPS = 1e-12

# Row layout of the packed "smalls" f32 array (lane width = 3*HIDDEN):
#   row 0: embedding LayerNorm gamma, row 1: embedding LayerNorm beta
#   then per layer (8 rows): bqkv(3H) | bo(H) | b1(I) | b2(H) |
#                            ln1_g | ln1_b | ln2_g | ln2_b
_SMALL_ROWS_PER_LAYER = 8
_SMALL_WIDTH = 3 * HIDDEN


def _layernorm(x, g, b, eps=LN_EPS):
    # two-pass (centered) variance for better numerics than E[x^2]-mu^2
    mu = jnp.mean(x, axis=-1, keepdims=True)
    xc = x - mu
    var = jnp.mean(xc * xc, axis=-1, keepdims=True)
    return xc * lax.rsqrt(var + eps) * g + b


# ---------------- fused Pallas kernel (one title per grid step) ----------------

def _encoder_kernel(ids_ref, wemb_ref, pemb_ref, temb_ref, smalls_ref,
                    wqkv_ref, wo_ref, w1_ref, w2_ref, o_ref):
    """Token gather + embedding LN + NUM_LAYERS encoder layers + CLS store."""
    b = pl.program_id(0)
    bf16 = jnp.bfloat16
    scale = 1.0 / math.sqrt(HEAD_DIM)

    # ---- fused embedding: in-kernel token gather + position/type add + LN ----
    rows = [wemb_ref[pl.ds(ids_ref[b, j], 1), :] for j in range(SEQ)]
    x = jnp.concatenate(rows, axis=0)                                # (S, H) f32
    x = x + pemb_ref[...] + temb_ref[...]
    x = _layernorm(x, smalls_ref[0:1, :HIDDEN], smalls_ref[1:2, :HIDDEN])

    for l in range(NUM_LAYERS):
        base = 2 + l * _SMALL_ROWS_PER_LAYER
        bqkv = smalls_ref[base + 0:base + 1, :]
        bo = smalls_ref[base + 1:base + 2, :HIDDEN]
        b1 = smalls_ref[base + 2:base + 3, :INTERMEDIATE]
        b2 = smalls_ref[base + 3:base + 4, :HIDDEN]
        ln1g = smalls_ref[base + 4:base + 5, :HIDDEN]
        ln1b = smalls_ref[base + 5:base + 6, :HIDDEN]
        ln2g = smalls_ref[base + 6:base + 7, :HIDDEN]
        ln2b = smalls_ref[base + 7:base + 8, :HIDDEN]

        # fused QKV projection: one lane-dense (S,H)x(H,3H) bf16 matmul, f32 acc
        qkv = jnp.dot(x.astype(bf16), wqkv_ref[l],
                      preferred_element_type=jnp.float32) + bqkv      # (S, 3H)
        qkv_b = qkv.astype(bf16)

        # self-attention: per-head score blocks stacked along a leading axis,
        # ONE softmax (single max/exp/sum/divide) over all heads.
        score_blocks, v_heads = [], []
        for h in range(NUM_HEADS):
            qh = qkv_b[:, h * HEAD_DIM:(h + 1) * HEAD_DIM]
            kh = qkv_b[:, HIDDEN + h * HEAD_DIM:HIDDEN + (h + 1) * HEAD_DIM]
            v_heads.append(qkv_b[:, 2 * HIDDEN + h * HEAD_DIM:
                                 2 * HIDDEN + (h + 1) * HEAD_DIM])
            score_blocks.append(
                lax.dot_general(qh, kh, (((1,), (1,)), ((), ())),
                                preferred_element_type=jnp.float32))  # (S, S)
        s = jnp.stack(score_blocks, axis=0) * scale                   # (NH, S, S)
        s = s - jnp.max(s, axis=-1, keepdims=True)
        p = jnp.exp(s)
        p = (p / jnp.sum(p, axis=-1, keepdims=True)).astype(bf16)     # exact softmax

        # per-head context + output projection accumulated in f32
        # (no lane concatenation of head contexts)
        attn = bo                                                     # (1, H) f32
        for h in range(NUM_HEADS):
            ctx_h = jnp.dot(p[h], v_heads[h],
                            preferred_element_type=jnp.float32)       # (S, HD)
            attn = attn + jnp.dot(ctx_h.astype(bf16),
                                  wo_ref[l * NUM_HEADS + h],
                                  preferred_element_type=jnp.float32)

        h1 = _layernorm(x + attn, ln1g, ln1b)

        # feed-forward
        ff = jnp.dot(h1.astype(bf16), w1_ref[l],
                     preferred_element_type=jnp.float32) + b1
        ff = jax.nn.gelu(ff, approximate=True)  # TODO(synk): BERT uses exact erf GELU
        ff = jnp.dot(ff.astype(bf16), w2_ref[l],
                     preferred_element_type=jnp.float32) + b2

        x = _layernorm(h1 + ff, ln2g, ln2b)

    # CLS token of this title: single lane-dense (1, 128) store
    o_ref[0] = x[0:1, :].astype(o_ref.dtype)


# ---------------- wrapper ----------------

def news_encoder_forward(input_ids, params):
    """NewsEncoder.forward: plm(input_ids).last_hidden_state[:, 0, :]."""
    B, S = input_ids.shape
    assert S == SEQ, "kernel is specialized to SEQ tokens per title"

    operands = (params["word_emb"], params["pos_emb"], params["type_emb"],
                params["smalls"], params["wqkv"], params["wo"],
                params["w1"], params["w2"])

    def resident(shape):
        # whole array as one block, constant index_map -> VMEM-resident across steps
        n = len(shape)
        return pl.BlockSpec(shape, lambda b, ids, _n=n: (0,) * _n)

    per_title_layer_flops = (
        2 * S * HIDDEN * 3 * HIDDEN                    # QKV projection
        + 2 * NUM_HEADS * S * S * HEAD_DIM * 2         # scores + context
        + 2 * S * HIDDEN * HIDDEN                      # attention output projection
        + 2 * 2 * S * HIDDEN * INTERMEDIATE)           # FFN
    cost = pl.CostEstimate(
        flops=int(B * NUM_LAYERS * per_title_layer_flops),
        transcendentals=int(B * NUM_LAYERS * (NUM_HEADS * S * S + S * INTERMEDIATE)),
        bytes_accessed=int(input_ids.size * 4 + B * HIDDEN * 4
                           + sum(int(op.nbytes) for op in operands)))

    out = pl.pallas_call(
        _encoder_kernel,
        out_shape=jax.ShapeDtypeStruct((B, 1, HIDDEN), jnp.float32),
        grid_spec=pltpu.PrefetchScalarGridSpec(
            num_scalar_prefetch=1,                 # input_ids -> SMEM
            grid=(B,),                             # one title per grid step
            in_specs=[resident(op.shape) for op in operands],
            out_specs=pl.BlockSpec((1, 1, HIDDEN), lambda b, ids: (b, 0, 0)),
        ),
        compiler_params=pltpu.CompilerParams(
            dimension_semantics=("parallel",),     # titles independent -> megacore
            vmem_limit_bytes=32 * 1024 * 1024),
        cost_estimate=cost,
    )(input_ids, *operands)
    return out.reshape(B, HIDDEN)


# ---------------- synthetic parameters (packed for the kernel) ----------------

def _pack_rows(rows):
    padded = [jnp.pad(jnp.asarray(r, jnp.float32).reshape(-1),
                      (0, _SMALL_WIDTH - r.size)) for r in rows]
    return jnp.stack(padded, axis=0)


def init_params(key):
    ks = jax.random.split(key, 3 + NUM_LAYERS)

    def rnd(k, shape):
        return (0.02 * jax.random.normal(k, shape)).astype(jnp.float32)

    small_rows = [jnp.ones((HIDDEN,)), jnp.zeros((HIDDEN,))]   # embedding LN g, b
    wqkv, wo, w1, w2 = [], [], [], []
    for l in range(NUM_LAYERS):
        lk = jax.random.split(ks[3 + l], 4)
        wqkv.append(rnd(lk[0], (HIDDEN, 3 * HIDDEN)))
        wo.append(rnd(lk[1], (HIDDEN, HIDDEN)))
        w1.append(rnd(lk[2], (HIDDEN, INTERMEDIATE)))
        w2.append(rnd(lk[3], (INTERMEDIATE, HIDDEN)))
        small_rows += [
            jnp.zeros((3 * HIDDEN,)),      # bqkv
            jnp.zeros((HIDDEN,)),          # bo
            jnp.zeros((INTERMEDIATE,)),    # b1
            jnp.zeros((HIDDEN,)),          # b2
            jnp.ones((HIDDEN,)), jnp.zeros((HIDDEN,)),   # ln1 gamma / beta
            jnp.ones((HIDDEN,)), jnp.zeros((HIDDEN,)),   # ln2 gamma / beta
        ]

    return {
        "word_emb": rnd(ks[0], (VOCAB, HIDDEN)),
        "pos_emb": rnd(ks[1], (SEQ, HIDDEN)),
        "type_emb": rnd(ks[2], (1, HIDDEN)),
        # all biases / LayerNorm params in ONE f32 array (single DMA descriptor)
        "smalls": _pack_rows(small_rows),
        # per-layer matmul weights stacked, bf16 MXU operands
        "wqkv": jnp.stack(wqkv).astype(jnp.bfloat16),                   # (L, H, 3H)
        # output projection pre-split per head: (L*NH, HD, H)
        "wo": jnp.stack(wo).reshape(NUM_LAYERS * NUM_HEADS, HEAD_DIM,
                                    HIDDEN).astype(jnp.bfloat16),
        "w1": jnp.stack(w1).astype(jnp.bfloat16),                       # (L, H, I)
        "w2": jnp.stack(w2).astype(jnp.bfloat16),                       # (L, I, H)
    }


# ---------------- pure-JAX reference (same math, for a sanity check) ----------------

def reference_forward(input_ids, params):
    B, S = input_ids.shape
    bf16, f32 = jnp.bfloat16, jnp.float32
    sm = params["smalls"]

    x = (params["word_emb"][input_ids]
         + params["pos_emb"][None, :S, :]
         + params["type_emb"][None])                                    # (B, S, H)
    x = _layernorm(x, sm[0, :HIDDEN], sm[1, :HIDDEN])
    for l in range(NUM_LAYERS):
        base = 2 + l * _SMALL_ROWS_PER_LAYER
        bqkv, bo = sm[base], sm[base + 1, :HIDDEN]
        b1, b2 = sm[base + 2, :INTERMEDIATE], sm[base + 3, :HIDDEN]
        ln1g, ln1b = sm[base + 4, :HIDDEN], sm[base + 5, :HIDDEN]
        ln2g, ln2b = sm[base + 6, :HIDDEN], sm[base + 7, :HIDDEN]
        wo_l = params["wo"][l * NUM_HEADS:(l + 1) * NUM_HEADS]          # (NH, HD, H)

        qkv = jnp.einsum("bsh,hk->bsk", x.astype(bf16), params["wqkv"][l],
                         preferred_element_type=f32) + bqkv
        qkv = qkv.astype(bf16)
        q = qkv[..., :HIDDEN].reshape(B, S, NUM_HEADS, HEAD_DIM)
        k = qkv[..., HIDDEN:2 * HIDDEN].reshape(B, S, NUM_HEADS, HEAD_DIM)
        v = qkv[..., 2 * HIDDEN:].reshape(B, S, NUM_HEADS, HEAD_DIM)
        s = jnp.einsum("bqnd,bknd->bnqk", q, k,
                       preferred_element_type=f32) / math.sqrt(HEAD_DIM)
        p = jax.nn.softmax(s, axis=-1).astype(bf16)
        ctx = jnp.einsum("bnqk,bknd->bqnd", p, v, preferred_element_type=f32)
        attn = jnp.einsum("bqnd,ndh->bqh", ctx.astype(bf16), wo_l,
                          preferred_element_type=f32) + bo
        h1 = _layernorm(x + attn, ln1g, ln1b)

        ff = jnp.einsum("bqh,hi->bqi", h1.astype(bf16), params["w1"][l],
                        preferred_element_type=f32) + b1
        ff = jax.nn.gelu(ff, approximate=True)
        ff = jnp.einsum("bqi,ih->bqh", ff.astype(bf16), params["w2"][l],
                        preferred_element_type=f32) + b2
        x = _layernorm(h1 + ff, ln2g, ln2b)
    return x[:, 0, :]


if __name__ == "__main__":
    key = jax.random.PRNGKey(0)
    pkey, dkey = jax.random.split(key)
    params = init_params(pkey)
    input_ids = jax.random.randint(dkey, (2, SEQ), 0, VOCAB, dtype=jnp.int32)

    out = news_encoder_forward(input_ids, params)
    jax.block_until_ready(out)
    assert out.shape == (2, HIDDEN) and out.dtype == jnp.float32

    ref = reference_forward(input_ids, params)
    err = float(jnp.max(jnp.abs(out - ref)))
    assert err < 5e-2, f"kernel/reference mismatch: max abs err {err}"
    print("KERNEL_OK")
</pallas_src>

<mosaic_0001>
module attributes {stable_mosaic.version = 11 : i64} {
  func.func @_encoder_kernel(%arg0: i32, %arg1: memref<2x8xi32, #tpu.memory_space<smem>>, %arg2: memref<50x128xf32, #tpu.memory_space<vmem>>, %arg3: memref<8x128xf32, #tpu.memory_space<vmem>>, %arg4: memref<1x128xf32, #tpu.memory_space<vmem>>, %arg5: memref<18x384xf32, #tpu.memory_space<vmem>>, %arg6: memref<2x128x384xbf16, #tpu.memory_space<vmem>>, %arg7: memref<8x32x128xbf16, #tpu.memory_space<vmem>>, %arg8: memref<2x128x256xbf16, #tpu.memory_space<vmem>>, %arg9: memref<2x256x128xbf16, #tpu.memory_space<vmem>>, %arg10: memref<1x1x128xf32, #tpu.memory_space<vmem>>) attributes {dimension_semantics = [#tpu.dimension_semantics<parallel>], iteration_bounds = array<i64: 2>, scalar_prefetch = 1 : i64, scratch_operands = 0 : i64, tpu.core_type = #tpu.core_type<tc>, window_params = [{pipeline_mode = #tpu.pipeline_mode<synchronous>, transform_indices = @transform_0, window_bounds = array<i64: 50, 128>}, {pipeline_mode = #tpu.pipeline_mode<synchronous>, transform_indices = @transform_1, window_bounds = array<i64: 8, 128>}, {pipeline_mode = #tpu.pipeline_mode<synchronous>, transform_indices = @transform_2, window_bounds = array<i64: 1, 128>}, {pipeline_mode = #tpu.pipeline_mode<synchronous>, transform_indices = @transform_3, window_bounds = array<i64: 18, 384>}, {pipeline_mode = #tpu.pipeline_mode<synchronous>, transform_indices = @transform_4, window_bounds = array<i64: 2, 128, 384>}, {pipeline_mode = #tpu.pipeline_mode<synchronous>, transform_indices = @transform_5, window_bounds = array<i64: 8, 32, 128>}, {pipeline_mode = #tpu.pipeline_mode<synchronous>, transform_indices = @transform_6, window_bounds = array<i64: 2, 128, 256>}, {pipeline_mode = #tpu.pipeline_mode<synchronous>, transform_indices = @transform_7, window_bounds = array<i64: 2, 256, 128>}, {transform_indices = @transform_8, window_bounds = array<i64: 1, 1, 128>}]} {
    %0 = arith.index_cast %arg0 : i32 to index
    %c0 = arith.constant 0 : index
    %1 = memref.load %arg1[%0, %c0] : memref<2x8xi32, #tpu.memory_space<smem>>
    %2 = arith.index_cast %1 : i32 to index
    %c0_0 = arith.constant 0 : index
    %3 = vector.load %arg2[%2, %c0_0] : memref<50x128xf32, #tpu.memory_space<vmem>>, vector<1x128xf32>
    %4 = arith.index_cast %arg0 : i32 to index
    %c1 = arith.constant 1 : index
    %5 = memref.load %arg1[%4, %c1] : memref<2x8xi32, #tpu.memory_space<smem>>
    %6 = arith.index_cast %5 : i32 to index
    %c0_1 = arith.constant 0 : index
    %7 = vector.load %arg2[%6, %c0_1] : memref<50x128xf32, #tpu.memory_space<vmem>>, vector<1x128xf32>
    %8 = arith.index_cast %arg0 : i32 to index
    %c2 = arith.constant 2 : index
    %9 = memref.load %arg1[%8, %c2] : memref<2x8xi32, #tpu.memory_space<smem>>
    %10 = arith.index_cast %9 : i32 to index
    %c0_2 = arith.constant 0 : index
    %11 = vector.load %arg2[%10, %c0_2] : memref<50x128xf32, #tpu.memory_space<vmem>>, vector<1x128xf32>
    %12 = arith.index_cast %arg0 : i32 to index
    %c3 = arith.constant 3 : index
    %13 = memref.load %arg1[%12, %c3] : memref<2x8xi32, #tpu.memory_space<smem>>
    %14 = arith.index_cast %13 : i32 to index
    %c0_3 = arith.constant 0 : index
    %15 = vector.load %arg2[%14, %c0_3] : memref<50x128xf32, #tpu.memory_space<vmem>>, vector<1x128xf32>
    %16 = arith.index_cast %arg0 : i32 to index
    %c4 = arith.constant 4 : index
    %17 = memref.load %arg1[%16, %c4] : memref<2x8xi32, #tpu.memory_space<smem>>
    %18 = arith.index_cast %17 : i32 to index
    %c0_4 = arith.constant 0 : index
    %19 = vector.load %arg2[%18, %c0_4] : memref<50x128xf32, #tpu.memory_space<vmem>>, vector<1x128xf32>
    %20 = arith.index_cast %arg0 : i32 to index
    %c5 = arith.constant 5 : index
    %21 = memref.load %arg1[%20, %c5] : memref<2x8xi32, #tpu.memory_space<smem>>
    %22 = arith.index_cast %21 : i32 to index
    %c0_5 = arith.constant 0 : index
    %23 = vector.load %arg2[%22, %c0_5] : memref<50x128xf32, #tpu.memory_space<vmem>>, vector<1x128xf32>
    %24 = arith.index_cast %arg0 : i32 to index
    %c6 = arith.constant 6 : index
    %25 = memref.load %arg1[%24, %c6] : memref<2x8xi32, #tpu.memory_space<smem>>
    %26 = arith.index_cast %25 : i32 to index
    %c0_6 = arith.constant 0 : index
    %27 = vector.load %arg2[%26, %c0_6] : memref<50x128xf32, #tpu.memory_space<vmem>>, vector<1x128xf32>
    %28 = arith.index_cast %arg0 : i32 to index
    %c7 = arith.constant 7 : index
    %29 = memref.load %arg1[%28, %c7] : memref<2x8xi32, #tpu.memory_space<smem>>
    %30 = arith.index_cast %29 : i32 to index
    %c0_7 = arith.constant 0 : index
    %31 = vector.load %arg2[%30, %c0_7] : memref<50x128xf32, #tpu.memory_space<vmem>>, vector<1x128xf32>
    %32 = tpu.concatenate %3, %7, %11, %15, %19, %23, %27, %31 in 0 : vector<1x128xf32>, vector<1x128xf32>, vector<1x128xf32>, vector<1x128xf32>, vector<1x128xf32>, vector<1x128xf32>, vector<1x128xf32>, vector<1x128xf32> -> vector<8x128xf32>
    %c0_8 = arith.constant 0 : index
    %c0_9 = arith.constant 0 : index
    %33 = vector.load %arg3[%c0_8, %c0_9] : memref<8x128xf32, #tpu.memory_space<vmem>>, vector<8x128xf32>
    %34 = arith.addf %32, %33 : vector<8x128xf32>
    %c0_10 = arith.constant 0 : index
    %c0_11 = arith.constant 0 : index
    %35 = vector.load %arg4[%c0_10, %c0_11] : memref<1x128xf32, #tpu.memory_space<vmem>>, vector<1x128xf32>
    %36 = vector.broadcast %35 : vector<1x128xf32> to vector<8x128xf32>
    %37 = arith.addf %34, %36 : vector<8x128xf32>
    %c0_12 = arith.constant 0 : index
    %c0_13 = arith.constant 0 : index
    %38 = vector.load %arg5[%c0_12, %c0_13] : memref<18x384xf32, #tpu.memory_space<vmem>>, vector<1x128xf32>
    %c1_14 = arith.constant 1 : index
    %c0_15 = arith.constant 0 : index
    %39 = vector.load %arg5[%c1_14, %c0_15] : memref<18x384xf32, #tpu.memory_space<vmem>>, vector<1x128xf32>
    %cst = arith.constant dense<0.000000e+00> : vector<8xf32>
    %40 = vector.multi_reduction <add>, %37, %cst [1] : vector<8x128xf32> to vector<8xf32>
    %41 = vector.shape_cast %40 : vector<8xf32> to vector<8x1xf32>
    %cst_16 = arith.constant 1.280000e+02 : f32
    %42 = vector.broadcast %cst_16 : f32 to vector<8x1xf32>
    %43 = arith.divf %41, %42 : vector<8x1xf32>
    %44 = vector.broadcast %43 : vector<8x1xf32> to vector<8x128xf32>
    %45 = arith.subf %37, %44 : vector<8x128xf32>
    %46 = arith.mulf %45, %45 : vector<8x128xf32>
    %cst_17 = arith.constant dense<0.000000e+00> : vector<8xf32>
    %47 = vector.multi_reduction <add>, %46, %cst_17 [1] : vector<8x128xf32> to vector<8xf32>
    %48 = vector.shape_cast %47 : vector<8xf32> to vector<8x1xf32>
    %cst_18 = arith.constant 1.280000e+02 : f32
    %49 = vector.broadcast %cst_18 : f32 to vector<8x1xf32>
    %50 = arith.divf %48, %49 : vector<8x1xf32>
    %cst_19 = arith.constant 9.99999996E-13 : f32
    %51 = vector.broadcast %cst_19 : f32 to vector<8x1xf32>
    %52 = arith.addf %50, %51 : vector<8x1xf32>
    %53 = math.rsqrt %52 : vector<8x1xf32>
    %54 = vector.broadcast %53 : vector<8x1xf32> to vector<8x128xf32>
    %55 = arith.mulf %45, %54 : vector<8x128xf32>
    %56 = vector.broadcast %38 : vector<1x128xf32> to vector<8x128xf32>
    %57 = arith.mulf %55, %56 : vector<8x128xf32>
    %58 = vector.broadcast %39 : vector<1x128xf32> to vector<8x128xf32>
    %59 = arith.addf %57, %58 : vector<8x128xf32>
    %c2_20 = arith.constant 2 : index
    %c0_21 = arith.constant 0 : index
    %60 = vector.load %arg5[%c2_20, %c0_21] : memref<18x384xf32, #tpu.memory_space<vmem>>, vector<1x384xf32>
    %c3_22 = arith.constant 3 : index
    %c0_23 = arith.constant 0 : index
    %61 = vector.load %arg5[%c3_22, %c0_23] : memref<18x384xf32, #tpu.memory_space<vmem>>, vector<1x128xf32>
    %c4_24 = arith.constant 4 : index
    %c0_25 = arith.constant 0 : index
    %62 = vector.load %arg5[%c4_24, %c0_25] : memref<18x384xf32, #tpu.memory_space<vmem>>, vector<1x256xf32>
    %c5_26 = arith.constant 5 : index
    %c0_27 = arith.constant 0 : index
    %63 = vector.load %arg5[%c5_26, %c0_27] : memref<18x384xf32, #tpu.memory_space<vmem>>, vector<1x128xf32>
    %c6_28 = arith.constant 6 : index
    %c0_29 = arith.constant 0 : index
    %64 = vector.load %arg5[%c6_28, %c0_29] : memref<18x384xf32, #tpu.memory_space<vmem>>, vector<1x128xf32>
    %c7_30 = arith.constant 7 : index
    %c0_31 = arith.constant 0 : index
    %65 = vector.load %arg5[%c7_30, %c0_31] : memref<18x384xf32, #tpu.memory_space<vmem>>, vector<1x128xf32>
    %c8 = arith.constant 8 : index
    %c0_32 = arith.constant 0 : index
    %66 = vector.load %arg5[%c8, %c0_32] : memref<18x384xf32, #tpu.memory_space<vmem>>, vector<1x128xf32>
    %c9 = arith.constant 9 : index
    %c0_33 = arith.constant 0 : index
    %67 = vector.load %arg5[%c9, %c0_33] : memref<18x384xf32, #tpu.memory_space<vmem>>, vector<1x128xf32>
    %68 = arith.truncf %59 : vector<8x128xf32> to vector<8x128xbf16>
    %c0_34 = arith.constant 0 : index
    %c0_35 = arith.constant 0 : index
    %c0_36 = arith.constant 0 : index
    %69 = vector.load %arg6[%c0_34, %c0_35, %c0_36] : memref<2x128x384xbf16, #tpu.memory_space<vmem>>, vector<1x128x384xbf16>
    %70 = vector.shape_cast %69 : vector<1x128x384xbf16> to vector<128x384xbf16>
    %cst_37 = arith.constant dense<0.000000e+00> : vector<8x384xf32>
    %71 = tpu.matmul %68, %70, %cst_37 {dimension_numbers = #tpu.dot_dimension_numbers<[1], [0], [0], [1], [0, 0, 1, 1], [], []>} : vector<8x128xbf16>, vector<128x384xbf16>, vector<8x384xf32> -> vector<8x384xf32>
    %72 = vector.broadcast %60 : vector<1x384xf32> to vector<8x384xf32>
    %73 = arith.addf %71, %72 : vector<8x384xf32>
    %74 = arith.truncf %73 : vector<8x384xf32> to vector<8x384xbf16>
    %75 = vector.extract_strided_slice %74 {offsets = [0, 0], sizes = [8, 32], strides = [1, 1]} : vector<8x384xbf16> to vector<8x32xbf16>
    %76 = vector.extract_strided_slice %74 {offsets = [0, 128], sizes = [8, 32], strides = [1, 1]} : vector<8x384xbf16> to vector<8x32xbf16>
    %77 = vector.extract_strided_slice %74 {offsets = [0, 256], sizes = [8, 32], strides = [1, 1]} : vector<8x384xbf16> to vector<8x32xbf16>
    %cst_38 = arith.constant dense<0.000000e+00> : vector<8x8xf32>
    %78 = tpu.matmul %75, %76, %cst_38 {dimension_numbers = #tpu.dot_dimension_numbers<[1], [1], [0], [0], [0, 0, 1, 0], [], []>} : vector<8x32xbf16>, vector<8x32xbf16>, vector<8x8xf32> -> vector<8x8xf32>
    %79 = vector.extract_strided_slice %74 {offsets = [0, 32], sizes = [8, 32], strides = [1, 1]} : vector<8x384xbf16> to vector<8x32xbf16>
    %80 = vector.extract_strided_slice %74 {offsets = [0, 160], sizes = [8, 32], strides = [1, 1]} : vector<8x384xbf16> to vector<8x32xbf16>
    %81 = vector.extract_strided_slice %74 {offsets = [0, 288], sizes = [8, 32], strides = [1, 1]} : vector<8x384xbf16> to vector<8x32xbf16>
    %cst_39 = arith.constant dense<0.000000e+00> : vector<8x8xf32>
    %82 = tpu.matmul %79, %80, %cst_39 {dimension_numbers = #tpu.dot_dimension_numbers<[1], [1], [0], [0], [0, 0, 1, 0], [], []>} : vector<8x32xbf16>, vector<8x32xbf16>, vector<8x8xf32> -> vector<8x8xf32>
    %83 = vector.extract_strided_slice %74 {offsets = [0, 64], sizes = [8, 32], strides = [1, 1]} : vector<8x384xbf16> to vector<8x32xbf16>
    %84 = vector.extract_strided_slice %74 {offsets = [0, 192], sizes = [8, 32], strides = [1, 1]} : vector<8x384xbf16> to vector<8x32xbf16>
    %85 = vector.extract_strided_slice %74 {offsets = [0, 320], sizes = [8, 32], strides = [1, 1]} : vector<8x384xbf16> to vector<8x32xbf16>
    %cst_40 = arith.constant dense<0.000000e+00> : vector<8x8xf32>
    %86 = tpu.matmul %83, %84, %cst_40 {dimension_numbers = #tpu.dot_dimension_numbers<[1], [1], [0], [0], [0, 0, 1, 0], [], []>} : vector<8x32xbf16>, vector<8x32xbf16>, vector<8x8xf32> -> vector<8x8xf32>
    %87 = vector.extract_strided_slice %74 {offsets = [0, 96], sizes = [8, 32], strides = [1, 1]} : vector<8x384xbf16> to vector<8x32xbf16>
    %88 = vector.extract_strided_slice %74 {offsets = [0, 224], sizes = [8, 32], strides = [1, 1]} : vector<8x384xbf16> to vector<8x32xbf16>
    %89 = vector.extract_strided_slice %74 {offsets = [0, 352], sizes = [8, 32], strides = [1, 1]} : vector<8x384xbf16> to vector<8x32xbf16>
    %cst_41 = arith.constant dense<0.000000e+00> : vector<8x8xf32>
    %90 = tpu.matmul %87, %88, %cst_41 {dimension_numbers = #tpu.dot_dimension_numbers<[1], [1], [0], [0], [0, 0, 1, 0], [], []>} : vector<8x32xbf16>, vector<8x32xbf16>, vector<8x8xf32> -> vector<8x8xf32>
    %91 = vector.shape_cast %78 : vector<8x8xf32> to vector<1x8x8xf32>
    %92 = vector.shape_cast %82 : vector<8x8xf32> to vector<1x8x8xf32>
    %93 = vector.shape_cast %86 : vector<8x8xf32> to vector<1x8x8xf32>
    %94 = vector.shape_cast %90 : vector<8x8xf32> to vector<1x8x8xf32>
    %95 = tpu.concatenate %91, %92, %93, %94 in 0 : vector<1x8x8xf32>, vector<1x8x8xf32>, vector<1x8x8xf32>, vector<1x8x8xf32> -> vector<4x8x8xf32>
    %cst_42 = arith.constant 0.176776692 : f32
    %96 = vector.broadcast %cst_42 : f32 to vector<4x8x8xf32>
    %97 = arith.mulf %95, %96 : vector<4x8x8xf32>
    %cst_43 = arith.constant dense<0xFF800000> : vector<4x8xf32>
    %98 = vector.multi_reduction <maximumf>, %97, %cst_43 [2] : vector<4x8x8xf32> to vector<4x8xf32>
    %99 = vector.shape_cast %98 : vector<4x8xf32> to vector<4x8x1xf32>
    %100 = vector.broadcast %99 : vector<4x8x1xf32> to vector<4x8x8xf32>
    %101 = arith.subf %97, %100 : vector<4x8x8xf32>
    %102 = math.exp %101 : vector<4x8x8xf32>
    %cst_44 = arith.constant dense<0.000000e+00> : vector<4x8xf32>
    %103 = vector.multi_reduction <add>, %102, %cst_44 [2] : vector<4x8x8xf32> to vector<4x8xf32>
    %104 = vector.shape_cast %103 : vector<4x8xf32> to vector<4x8x1xf32>
    %105 = vector.broadcast %104 : vector<4x8x1xf32> to vector<4x8x8xf32>
    %106 = arith.divf %102, %105 : vector<4x8x8xf32>
    %107 = arith.truncf %106 : vector<4x8x8xf32> to vector<4x8x8xbf16>
    %108 = vector.extract_strided_slice %107 {offsets = [0, 0, 0], sizes = [1, 8, 8], strides = [1, 1, 1]} : vector<4x8x8xbf16> to vector<1x8x8xbf16>
    %109 = vector.shape_cast %108 : vector<1x8x8xbf16> to vector<8x8xbf16>
    %cst_45 = arith.constant dense<0.000000e+00> : vector<8x32xf32>
    %110 = tpu.matmul %109, %77, %cst_45 {dimension_numbers = #tpu.dot_dimension_numbers<[1], [0], [0], [1], [0, 0, 1, 1], [], []>} : vector<8x8xbf16>, vector<8x32xbf16>, vector<8x32xf32> -> vector<8x32xf32>
    %111 = arith.truncf %110 : vector<8x32xf32> to vector<8x32xbf16>
    %c0_46 = arith.constant 0 : index
    %c0_47 = arith.constant 0 : index
    %c0_48 = arith.constant 0 : index
    %112 = vector.load %arg7[%c0_46, %c0_47, %c0_48] : memref<8x32x128xbf16, #tpu.memory_space<vmem>>, vector<1x32x128xbf16>
    %113 = vector.shape_cast %112 : vector<1x32x128xbf16> to vector<32x128xbf16>
    %cst_49 = arith.constant dense<0.000000e+00> : vector<8x128xf32>
    %114 = tpu.matmul %111, %113, %cst_49 {dimension_numbers = #tpu.dot_dimension_numbers<[1], [0], [0], [1], [0, 0, 1, 1], [], []>} : vector<8x32xbf16>, vector<32x128xbf16>, vector<8x128xf32> -> vector<8x128xf32>
    %115 = vector.broadcast %61 : vector<1x128xf32> to vector<8x128xf32>
    %116 = arith.addf %115, %114 : vector<8x128xf32>
    %117 = vector.extract_strided_slice %107 {offsets = [1, 0, 0], sizes = [1, 8, 8], strides = [1, 1, 1]} : vector<4x8x8xbf16> to vector<1x8x8xbf16>
    %118 = vector.shape_cast %117 : vector<1x8x8xbf16> to vector<8x8xbf16>
    %cst_50 = arith.constant dense<0.000000e+00> : vector<8x32xf32>
    %119 = tpu.matmul %118, %81, %cst_50 {dimension_numbers = #tpu.dot_dimension_numbers<[1], [0], [0], [1], [0, 0, 1, 1], [], []>} : vector<8x8xbf16>, vector<8x32xbf16>, vector<8x32xf32> -> vector<8x32xf32>
    %120 = arith.truncf %119 : vector<8x32xf32> to vector<8x32xbf16>
    %c1_51 = arith.constant 1 : index
    %c0_52 = arith.constant 0 : index
    %c0_53 = arith.constant 0 : index
    %121 = vector.load %arg7[%c1_51, %c0_52, %c0_53] : memref<8x32x128xbf16, #tpu.memory_space<vmem>>, vector<1x32x128xbf16>
    %122 = vector.shape_cast %121 : vector<1x32x128xbf16> to vector<32x128xbf16>
    %cst_54 = arith.constant dense<0.000000e+00> : vector<8x128xf32>
    %123 = tpu.matmul %120, %122, %cst_54 {dimension_numbers = #tpu.dot_dimension_numbers<[1], [0], [0], [1], [0, 0, 1, 1], [], []>} : vector<8x32xbf16>, vector<32x128xbf16>, vector<8x128xf32> -> vector<8x128xf32>
    %124 = arith.addf %116, %123 : vector<8x128xf32>
    %125 = vector.extract_strided_slice %107 {offsets = [2, 0, 0], sizes = [1, 8, 8], strides = [1, 1, 1]} : vector<4x8x8xbf16> to vector<1x8x8xbf16>
    %126 = vector.shape_cast %125 : vector<1x8x8xbf16> to vector<8x8xbf16>
    %cst_55 = arith.constant dense<0.000000e+00> : vector<8x32xf32>
    %127 = tpu.matmul %126, %85, %cst_55 {dimension_numbers = #tpu.dot_dimension_numbers<[1], [0], [0], [1], [0, 0, 1, 1], [], []>} : vector<8x8xbf16>, vector<8x32xbf16>, vector<8x32xf32> -> vector<8x32xf32>
    %128 = arith.truncf %127 : vector<8x32xf32> to vector<8x32xbf16>
    %c2_56 = arith.constant 2 : index
    %c0_57 = arith.constant 0 : index
    %c0_58 = arith.constant 0 : index
    %129 = vector.load %arg7[%c2_56, %c0_57, %c0_58] : memref<8x32x128xbf16, #tpu.memory_space<vmem>>, vector<1x32x128xbf16>
    %130 = vector.shape_cast %129 : vector<1x32x128xbf16> to vector<32x128xbf16>
    %cst_59 = arith.constant dense<0.000000e+00> : vector<8x128xf32>
    %131 = tpu.matmul %128, %130, %cst_59 {dimension_numbers = #tpu.dot_dimension_numbers<[1], [0], [0], [1], [0, 0, 1, 1], [], []>} : vector<8x32xbf16>, vector<32x128xbf16>, vector<8x128xf32> -> vector<8x128xf32>
    %132 = arith.addf %124, %131 : vector<8x128xf32>
    %133 = vector.extract_strided_slice %107 {offsets = [3, 0, 0], sizes = [1, 8, 8], strides = [1, 1, 1]} : vector<4x8x8xbf16> to vector<1x8x8xbf16>
    %134 = vector.shape_cast %133 : vector<1x8x8xbf16> to vector<8x8xbf16>
    %cst_60 = arith.constant dense<0.000000e+00> : vector<8x32xf32>
    %135 = tpu.matmul %134, %89, %cst_60 {dimension_numbers = #tpu.dot_dimension_numbers<[1], [0], [0], [1], [0, 0, 1, 1], [], []>} : vector<8x8xbf16>, vector<8x32xbf16>, vector<8x32xf32> -> vector<8x32xf32>
    %136 = arith.truncf %135 : vector<8x32xf32> to vector<8x32xbf16>
    %c3_61 = arith.constant 3 : index
    %c0_62 = arith.constant 0 : index
    %c0_63 = arith.constant 0 : index
    %137 = vector.load %arg7[%c3_61, %c0_62, %c0_63] : memref<8x32x128xbf16, #tpu.memory_space<vmem>>, vector<1x32x128xbf16>
    %138 = vector.shape_cast %137 : vector<1x32x128xbf16> to vector<32x128xbf16>
    %cst_64 = arith.constant dense<0.000000e+00> : vector<8x128xf32>
    %139 = tpu.matmul %136, %138, %cst_64 {dimension_numbers = #tpu.dot_dimension_numbers<[1], [0], [0], [1], [0, 0, 1, 1], [], []>} : vector<8x32xbf16>, vector<32x128xbf16>, vector<8x128xf32> -> vector<8x128xf32>
    %140 = arith.addf %132, %139 : vector<8x128xf32>
    %141 = arith.addf %59, %140 : vector<8x128xf32>
    %cst_65 = arith.constant dense<0.000000e+00> : vector<8xf32>
    %142 = vector.multi_reduction <add>, %141, %cst_65 [1] : vector<8x128xf32> to vector<8xf32>
    %143 = vector.shape_cast %142 : vector<8xf32> to vector<8x1xf32>
    %cst_66 = arith.constant 1.280000e+02 : f32
    %144 = vector.broadcast %cst_66 : f32 to vector<8x1xf32>
    %145 = arith.divf %143, %144 : vector<8x1xf32>
    %146 = vector.broadcast %145 : vector<8x1xf32> to vector<8x128xf32>
    %147 = arith.subf %141, %146 : vector<8x128xf32>
    %148 = arith.mulf %147, %147 : vector<8x128xf32>
    %cst_67 = arith.constant dense<0.000000e+00> : vector<8xf32>
    %149 = vector.multi_reduction <add>, %148, %cst_67 [1] : vector<8x128xf32> to vector<8xf32>
    %150 = vector.shape_cast %149 : vector<8xf32> to vector<8x1xf32>
    %cst_68 = arith.constant 1.280000e+02 : f32
    %151 = vector.broadcast %cst_68 : f32 to vector<8x1xf32>
    %152 = arith.divf %150, %151 : vector<8x1xf32>
    %cst_69 = arith.constant 9.99999996E-13 : f32
    %153 = vector.broadcast %cst_69 : f32 to vector<8x1xf32>
    %154 = arith.addf %152, %153 : vector<8x1xf32>
    %155 = math.rsqrt %154 : vector<8x1xf32>
    %156 = vector.broadcast %155 : vector<8x1xf32> to vector<8x128xf32>
    %157 = arith.mulf %147, %156 : vector<8x128xf32>
    %158 = vector.broadcast %64 : vector<1x128xf32> to vector<8x128xf32>
    %159 = arith.mulf %157, %158 : vector<8x128xf32>
    %160 = vector.broadcast %65 : vector<1x128xf32> to vector<8x128xf32>
    %161 = arith.addf %159, %160 : vector<8x128xf32>
    %162 = arith.truncf %161 : vector<8x128xf32> to vector<8x128xbf16>
    %c0_70 = arith.constant 0 : index
    %c0_71 = arith.constant 0 : index
    %c0_72 = arith.constant 0 : index
    %163 = vector.load %arg8[%c0_70, %c0_71, %c0_72] : memref<2x128x256xbf16, #tpu.memory_space<vmem>>, vector<1x128x256xbf16>
    %164 = vector.shape_cast %163 : vector<1x128x256xbf16> to vector<128x256xbf16>
    %cst_73 = arith.constant dense<0.000000e+00> : vector<8x256xf32>
    %165 = tpu.matmul %162, %164, %cst_73 {dimension_numbers = #tpu.dot_dimension_numbers<[1], [0], [0], [1], [0, 0, 1, 1], [], []>} : vector<8x128xbf16>, vector<128x256xbf16>, vector<8x256xf32> -> vector<8x256xf32>
    %166 = vector.broadcast %62 : vector<1x256xf32> to vector<8x256xf32>
    %167 = arith.addf %165, %166 : vector<8x256xf32>
    %168 = arith.mulf %167, %167 : vector<8x256xf32>
    %169 = arith.mulf %167, %168 : vector<8x256xf32>
    %cst_74 = arith.constant 4.471500e-02 : f32
    %170 = vector.broadcast %cst_74 : f32 to vector<8x256xf32>
    %171 = arith.mulf %170, %169 : vector<8x256xf32>
    %172 = arith.addf %167, %171 : vector<8x256xf32>
    %cst_75 = arith.constant 0.797884583 : f32
    %173 = vector.broadcast %cst_75 : f32 to vector<8x256xf32>
    %174 = arith.mulf %173, %172 : vector<8x256xf32>
    %175 = math.tanh %174 : vector<8x256xf32>
    %cst_76 = arith.constant 1.000000e+00 : f32
    %176 = vector.broadcast %cst_76 : f32 to vector<8x256xf32>
    %177 = arith.addf %176, %175 : vector<8x256xf32>
    %cst_77 = arith.constant 5.000000e-01 : f32
    %178 = vector.broadcast %cst_77 : f32 to vector<8x256xf32>
    %179 = arith.mulf %178, %177 : vector<8x256xf32>
    %180 = arith.mulf %167, %179 : vector<8x256xf32>
    %181 = arith.truncf %180 : vector<8x256xf32> to vector<8x256xbf16>
    %c0_78 = arith.constant 0 : index
    %c0_79 = arith.constant 0 : index
    %c0_80 = arith.constant 0 : index
    %182 = vector.load %arg9[%c0_78, %c0_79, %c0_80] : memref<2x256x128xbf16, #tpu.memory_space<vmem>>, vector<1x256x128xbf16>
    %183 = vector.shape_cast %182 : vector<1x256x128xbf16> to vector<256x128xbf16>
    %cst_81 = arith.constant dense<0.000000e+00> : vector<8x128xf32>
    %184 = tpu.matmul %181, %183, %cst_81 {dimension_numbers = #tpu.dot_dimension_numbers<[1], [0], [0], [1], [0, 0, 1, 1], [], []>} : vector<8x256xbf16>, vector<256x128xbf16>, vector<8x128xf32> -> vector<8x128xf32>
    %185 = vector.broadcast %63 : vector<1x128xf32> to vector<8x128xf32>
    %186 = arith.addf %184, %185 : vector<8x128xf32>
    %187 = arith.addf %161, %186 : vector<8x128xf32>
    %cst_82 = arith.constant dense<0.000000e+00> : vector<8xf32>
    %188 = vector.multi_reduction <add>, %187, %cst_82 [1] : vector<8x128xf32> to vector<8xf32>
    %189 = vector.shape_cast %188 : vector<8xf32> to vector<8x1xf32>
    %cst_83 = arith.constant 1.280000e+02 : f32
    %190 = vector.broadcast %cst_83 : f32 to vector<8x1xf32>
    %191 = arith.divf %189, %190 : vector<8x1xf32>
    %192 = vector.broadcast %191 : vector<8x1xf32> to vector<8x128xf32>
    %193 = arith.subf %187, %192 : vector<8x128xf32>
    %194 = arith.mulf %193, %193 : vector<8x128xf32>
    %cst_84 = arith.constant dense<0.000000e+00> : vector<8xf32>
    %195 = vector.multi_reduction <add>, %194, %cst_84 [1] : vector<8x128xf32> to vector<8xf32>
    %196 = vector.shape_cast %195 : vector<8xf32> to vector<8x1xf32>
    %cst_85 = arith.constant 1.280000e+02 : f32
    %197 = vector.broadcast %cst_85 : f32 to vector<8x1xf32>
    %198 = arith.divf %196, %197 : vector<8x1xf32>
    %cst_86 = arith.constant 9.99999996E-13 : f32
    %199 = vector.broadcast %cst_86 : f32 to vector<8x1xf32>
    %200 = arith.addf %198, %199 : vector<8x1xf32>
    %201 = math.rsqrt %200 : vector<8x1xf32>
    %202 = vector.broadcast %201 : vector<8x1xf32> to vector<8x128xf32>
    %203 = arith.mulf %193, %202 : vector<8x128xf32>
    %204 = vector.broadcast %66 : vector<1x128xf32> to vector<8x128xf32>
    %205 = arith.mulf %203, %204 : vector<8x128xf32>
    %206 = vector.broadcast %67 : vector<1x128xf32> to vector<8x128xf32>
    %207 = arith.addf %205, %206 : vector<8x128xf32>
    %c10 = arith.constant 10 : index
    %c0_87 = arith.constant 0 : index
    %208 = vector.load %arg5[%c10, %c0_87] : memref<18x384xf32, #tpu.memory_space<vmem>>, vector<1x384xf32>
    %c11 = arith.constant 11 : index
    %c0_88 = arith.constant 0 : index
    %209 = vector.load %arg5[%c11, %c0_88] : memref<18x384xf32, #tpu.memory_space<vmem>>, vector<1x128xf32>
    %c12 = arith.constant 12 : index
    %c0_89 = arith.constant 0 : index
    %210 = vector.load %arg5[%c12, %c0_89] : memref<18x384xf32, #tpu.memory_space<vmem>>, vector<1x256xf32>
    %c13 = arith.constant 13 : index
    %c0_90 = arith.constant 0 : index
    %211 = vector.load %arg5[%c13, %c0_90] : memref<18x384xf32, #tpu.memory_space<vmem>>, vector<1x128xf32>
    %c14 = arith.constant 14 : index
    %c0_91 = arith.constant 0 : index
    %212 = vector.load %arg5[%c14, %c0_91] : memref<18x384xf32, #tpu.memory_space<vmem>>, vector<1x128xf32>
    %c15 = arith.constant 15 : index
    %c0_92 = arith.constant 0 : index
    %213 = vector.load %arg5[%c15, %c0_92] : memref<18x384xf32, #tpu.memory_space<vmem>>, vector<1x128xf32>
    %c16 = arith.constant 16 : index
    %c0_93 = arith.constant 0 : index
    %214 = vector.load %arg5[%c16, %c0_93] : memref<18x384xf32, #tpu.memory_space<vmem>>, vector<1x128xf32>
    %c17 = arith.constant 17 : index
    %c0_94 = arith.constant 0 : index
    %215 = vector.load %arg5[%c17, %c0_94] : memref<18x384xf32, #tpu.memory_space<vmem>>, vector<1x128xf32>
    %216 = arith.truncf %207 : vector<8x128xf32> to vector<8x128xbf16>
    %c1_95 = arith.constant 1 : index
    %c0_96 = arith.constant 0 : index
    %c0_97 = arith.constant 0 : index
    %217 = vector.load %arg6[%c1_95, %c0_96, %c0_97] : memref<2x128x384xbf16, #tpu.memory_space<vmem>>, vector<1x128x384xbf16>
    %218 = vector.shape_cast %217 : vector<1x128x384xbf16> to vector<128x384xbf16>
    %cst_98 = arith.constant dense<0.000000e+00> : vector<8x384xf32>
    %219 = tpu.matmul %216, %218, %cst_98 {dimension_numbers = #tpu.dot_dimension_numbers<[1], [0], [0], [1], [0, 0, 1, 1], [], []>} : vector<8x128xbf16>, vector<128x384xbf16>, vector<8x384xf32> -> vector<8x384xf32>
    %220 = vector.broadcast %208 : vector<1x384xf32> to vector<8x384xf32>
    %221 = arith.addf %219, %220 : vector<8x384xf32>
    %222 = arith.truncf %221 : vector<8x384xf32> to vector<8x384xbf16>
    %223 = vector.extract_strided_slice %222 {offsets = [0, 0], sizes = [8, 32], strides = [1, 1]} : vector<8x384xbf16> to vector<8x32xbf16>
    %224 = vector.extract_strided_slice %222 {offsets = [0, 128], sizes = [8, 32], strides = [1, 1]} : vector<8x384xbf16> to vector<8x32xbf16>
    %225 = vector.extract_strided_slice %222 {offsets = [0, 256], sizes = [8, 32], strides = [1, 1]} : vector<8x384xbf16> to vector<8x32xbf16>
    %cst_99 = arith.constant dense<0.000000e+00> : vector<8x8xf32>
    %226 = tpu.matmul %223, %224, %cst_99 {dimension_numbers = #tpu.dot_dimension_numbers<[1], [1], [0], [0], [0, 0, 1, 0], [], []>} : vector<8x32xbf16>, vector<8x32xbf16>, vector<8x8xf32> -> vector<8x8xf32>
    %227 = vector.extract_strided_slice %222 {offsets = [0, 32], sizes = [8, 32], strides = [1, 1]} : vector<8x384xbf16> to vector<8x32xbf16>
    %228 = vector.extract_strided_slice %222 {offsets = [0, 160], sizes = [8, 32], strides = [1, 1]} : vector<8x384xbf16> to vector<8x32xbf16>
    %229 = vector.extract_strided_slice %222 {offsets = [0, 288], sizes = [8, 32], strides = [1, 1]} : vector<8x384xbf16> to vector<8x32xbf16>
    %cst_100 = arith.constant dense<0.000000e+00> : vector<8x8xf32>
    %230 = tpu.matmul %227, %228, %cst_100 {dimension_numbers = #tpu.dot_dimension_numbers<[1], [1], [0], [0], [0, 0, 1, 0], [], []>} : vector<8x32xbf16>, vector<8x32xbf16>, vector<8x8xf32> -> vector<8x8xf32>
    %231 = vector.extract_strided_slice %222 {offsets = [0, 64], sizes = [8, 32], strides = [1, 1]} : vector<8x384xbf16> to vector<8x32xbf16>
    %232 = vector.extract_strided_slice %222 {offsets = [0, 192], sizes = [8, 32], strides = [1, 1]} : vector<8x384xbf16> to vector<8x32xbf16>
    %233 = vector.extract_strided_slice %222 {offsets = [0, 320], sizes = [8, 32], strides = [1, 1]} : vector<8x384xbf16> to vector<8x32xbf16>
    %cst_101 = arith.constant dense<0.000000e+00> : vector<8x8xf32>
    %234 = tpu.matmul %231, %232, %cst_101 {dimension_numbers = #tpu.dot_dimension_numbers<[1], [1], [0], [0], [0, 0, 1, 0], [], []>} : vector<8x32xbf16>, vector<8x32xbf16>, vector<8x8xf32> -> vector<8x8xf32>
    %235 = vector.extract_strided_slice %222 {offsets = [0, 96], sizes = [8, 32], strides = [1, 1]} : vector<8x384xbf16> to vector<8x32xbf16>
    %236 = vector.extract_strided_slice %222 {offsets = [0, 224], sizes = [8, 32], strides = [1, 1]} : vector<8x384xbf16> to vector<8x32xbf16>
    %237 = vector.extract_strided_slice %222 {offsets = [0, 352], sizes = [8, 32], strides = [1, 1]} : vector<8x384xbf16> to vector<8x32xbf16>
    %cst_102 = arith.constant dense<0.000000e+00> : vector<8x8xf32>
    %238 = tpu.matmul %235, %236, %cst_102 {dimension_numbers = #tpu.dot_dimension_numbers<[1], [1], [0], [0], [0, 0, 1, 0], [], []>} : vector<8x32xbf16>, vector<8x32xbf16>, vector<8x8xf32> -> vector<8x8xf32>
    %239 = vector.shape_cast %226 : vector<8x8xf32> to vector<1x8x8xf32>
    %240 = vector.shape_cast %230 : vector<8x8xf32> to vector<1x8x8xf32>
    %241 = vector.shape_cast %234 : vector<8x8xf32> to vector<1x8x8xf32>
    %242 = vector.shape_cast %238 : vector<8x8xf32> to vector<1x8x8xf32>
    %243 = tpu.concatenate %239, %240, %241, %242 in 0 : vector<1x8x8xf32>, vector<1x8x8xf32>, vector<1x8x8xf32>, vector<1x8x8xf32> -> vector<4x8x8xf32>
    %cst_103 = arith.constant 0.176776692 : f32
    %244 = vector.broadcast %cst_103 : f32 to vector<4x8x8xf32>
    %245 = arith.mulf %243, %244 : vector<4x8x8xf32>
    %cst_104 = arith.constant dense<0xFF800000> : vector<4x8xf32>
    %246 = vector.multi_reduction <maximumf>, %245, %cst_104 [2] : vector<4x8x8xf32> to vector<4x8xf32>
    %247 = vector.shape_cast %246 : vector<4x8xf32> to vector<4x8x1xf32>
    %248 = vector.broadcast %247 : vector<4x8x1xf32> to vector<4x8x8xf32>
    %249 = arith.subf %245, %248 : vector<4x8x8xf32>
    %250 = math.exp %249 : vector<4x8x8xf32>
    %cst_105 = arith.constant dense<0.000000e+00> : vector<4x8xf32>
    %251 = vector.multi_reduction <add>, %250, %cst_105 [2] : vector<4x8x8xf32> to vector<4x8xf32>
    %252 = vector.shape_cast %251 : vector<4x8xf32> to vector<4x8x1xf32>
    %253 = vector.broadcast %252 : vector<4x8x1xf32> to vector<4x8x8xf32>
    %254 = arith.divf %250, %253 : vector<4x8x8xf32>
    %255 = arith.truncf %254 : vector<4x8x8xf32> to vector<4x8x8xbf16>
    %256 = vector.extract_strided_slice %255 {offsets = [0, 0, 0], sizes = [1, 8, 8], strides = [1, 1, 1]} : vector<4x8x8xbf16> to vector<1x8x8xbf16>
    %257 = vector.shape_cast %256 : vector<1x8x8xbf16> to vector<8x8xbf16>
    %cst_106 = arith.constant dense<0.000000e+00> : vector<8x32xf32>
    %258 = tpu.matmul %257, %225, %cst_106 {dimension_numbers = #tpu.dot_dimension_numbers<[1], [0], [0], [1], [0, 0, 1, 1], [], []>} : vector<8x8xbf16>, vector<8x32xbf16>, vector<8x32xf32> -> vector<8x32xf32>
    %259 = arith.truncf %258 : vector<8x32xf32> to vector<8x32xbf16>
    %c4_107 = arith.constant 4 : index
    %c0_108 = arith.constant 0 : index
    %c0_109 = arith.constant 0 : index
    %260 = vector.load %arg7[%c4_107, %c0_108, %c0_109] : memref<8x32x128xbf16, #tpu.memory_space<vmem>>, vector<1x32x128xbf16>
    %261 = vector.shape_cast %260 : vector<1x32x128xbf16> to vector<32x128xbf16>
    %cst_110 = arith.constant dense<0.000000e+00> : vector<8x128xf32>
    %262 = tpu.matmul %259, %261, %cst_110 {dimension_numbers = #tpu.dot_dimension_numbers<[1], [0], [0], [1], [0, 0, 1, 1], [], []>} : vector<8x32xbf16>, vector<32x128xbf16>, vector<8x128xf32> -> vector<8x128xf32>
    %263 = vector.broadcast %209 : vector<1x128xf32> to vector<8x128xf32>
    %264 = arith.addf %263, %262 : vector<8x128xf32>
    %265 = vector.extract_strided_slice %255 {offsets = [1, 0, 0], sizes = [1, 8, 8], strides = [1, 1, 1]} : vector<4x8x8xbf16> to vector<1x8x8xbf16>
    %266 = vector.shape_cast %265 : vector<1x8x8xbf16> to vector<8x8xbf16>
    %cst_111 = arith.constant dense<0.000000e+00> : vector<8x32xf32>
    %267 = tpu.matmul %266, %229, %cst_111 {dimension_numbers = #tpu.dot_dimension_numbers<[1], [0], [0], [1], [0, 0, 1, 1], [], []>} : vector<8x8xbf16>, vector<8x32xbf16>, vector<8x32xf32> -> vector<8x32xf32>
    %268 = arith.truncf %267 : vector<8x32xf32> to vector<8x32xbf16>
    %c5_112 = arith.constant 5 : index
    %c0_113 = arith.constant 0 : index
    %c0_114 = arith.constant 0 : index
    %269 = vector.load %arg7[%c5_112, %c0_113, %c0_114] : memref<8x32x128xbf16, #tpu.memory_space<vmem>>, vector<1x32x128xbf16>
    %270 = vector.shape_cast %269 : vector<1x32x128xbf16> to vector<32x128xbf16>
    %cst_115 = arith.constant dense<0.000000e+00> : vector<8x128xf32>
    %271 = tpu.matmul %268, %270, %cst_115 {dimension_numbers = #tpu.dot_dimension_numbers<[1], [0], [0], [1], [0, 0, 1, 1], [], []>} : vector<8x32xbf16>, vector<32x128xbf16>, vector<8x128xf32> -> vector<8x128xf32>
    %272 = arith.addf %264, %271 : vector<8x128xf32>
    %273 = vector.extract_strided_slice %255 {offsets = [2, 0, 0], sizes = [1, 8, 8], strides = [1, 1, 1]} : vector<4x8x8xbf16> to vector<1x8x8xbf16>
    %274 = vector.shape_cast %273 : vector<1x8x8xbf16> to vector<8x8xbf16>
    %cst_116 = arith.constant dense<0.000000e+00> : vector<8x32xf32>
    %275 = tpu.matmul %274, %233, %cst_116 {dimension_numbers = #tpu.dot_dimension_numbers<[1], [0], [0], [1], [0, 0, 1, 1], [], []>} : vector<8x8xbf16>, vector<8x32xbf16>, vector<8x32xf32> -> vector<8x32xf32>
    %276 = arith.truncf %275 : vector<8x32xf32> to vector<8x32xbf16>
    %c6_117 = arith.constant 6 : index
    %c0_118 = arith.constant 0 : index
    %c0_119 = arith.constant 0 : index
    %277 = vector.load %arg7[%c6_117, %c0_118, %c0_119] : memref<8x32x128xbf16, #tpu.memory_space<vmem>>, vector<1x32x128xbf16>
    %278 = vector.shape_cast %277 : vector<1x32x128xbf16> to vector<32x128xbf16>
    %cst_120 = arith.constant dense<0.000000e+00> : vector<8x128xf32>
    %279 = tpu.matmul %276, %278, %cst_120 {dimension_numbers = #tpu.dot_dimension_numbers<[1], [0], [0], [1], [0, 0, 1, 1], [], []>} : vector<8x32xbf16>, vector<32x128xbf16>, vector<8x128xf32> -> vector<8x128xf32>
    %280 = arith.addf %272, %279 : vector<8x128xf32>
    %281 = vector.extract_strided_slice %255 {offsets = [3, 0, 0], sizes = [1, 8, 8], strides = [1, 1, 1]} : vector<4x8x8xbf16> to vector<1x8x8xbf16>
    %282 = vector.shape_cast %281 : vector<1x8x8xbf16> to vector<8x8xbf16>
    %cst_121 = arith.constant dense<0.000000e+00> : vector<8x32xf32>
    %283 = tpu.matmul %282, %237, %cst_121 {dimension_numbers = #tpu.dot_dimension_numbers<[1], [0], [0], [1], [0, 0, 1, 1], [], []>} : vector<8x8xbf16>, vector<8x32xbf16>, vector<8x32xf32> -> vector<8x32xf32>
    %284 = arith.truncf %283 : vector<8x32xf32> to vector<8x32xbf16>
    %c7_122 = arith.constant 7 : index
    %c0_123 = arith.constant 0 : index
    %c0_124 = arith.constant 0 : index
    %285 = vector.load %arg7[%c7_122, %c0_123, %c0_124] : memref<8x32x128xbf16, #tpu.memory_space<vmem>>, vector<1x32x128xbf16>
    %286 = vector.shape_cast %285 : vector<1x32x128xbf16> to vector<32x128xbf16>
    %cst_125 = arith.constant dense<0.000000e+00> : vector<8x128xf32>
    %287 = tpu.matmul %284, %286, %cst_125 {dimension_numbers = #tpu.dot_dimension_numbers<[1], [0], [0], [1], [0, 0, 1, 1], [], []>} : vector<8x32xbf16>, vector<32x128xbf16>, vector<8x128xf32> -> vector<8x128xf32>
    %288 = arith.addf %280, %287 : vector<8x128xf32>
    %289 = arith.addf %207, %288 : vector<8x128xf32>
    %cst_126 = arith.constant dense<0.000000e+00> : vector<8xf32>
    %290 = vector.multi_reduction <add>, %289, %cst_126 [1] : vector<8x128xf32> to vector<8xf32>
    %291 = vector.shape_cast %290 : vector<8xf32> to vector<8x1xf32>
    %cst_127 = arith.constant 1.280000e+02 : f32
    %292 = vector.broadcast %cst_127 : f32 to vector<8x1xf32>
    %293 = arith.divf %291, %292 : vector<8x1xf32>
    %294 = vector.broadcast %293 : vector<8x1xf32> to vector<8x128xf32>
    %295 = arith.subf %289, %294 : vector<8x128xf32>
    %296 = arith.mulf %295, %295 : vector<8x128xf32>
    %cst_128 = arith.constant dense<0.000000e+00> : vector<8xf32>
    %297 = vector.multi_reduction <add>, %296, %cst_128 [1] : vector<8x128xf32> to vector<8xf32>
    %298 = vector.shape_cast %297 : vector<8xf32> to vector<8x1xf32>
    %cst_129 = arith.constant 1.280000e+02 : f32
    %299 = vector.broadcast %cst_129 : f32 to vector<8x1xf32>
    %300 = arith.divf %298, %299 : vector<8x1xf32>
    %cst_130 = arith.constant 9.99999996E-13 : f32
    %301 = vector.broadcast %cst_130 : f32 to vector<8x1xf32>
    %302 = arith.addf %300, %301 : vector<8x1xf32>
    %303 = math.rsqrt %302 : vector<8x1xf32>
    %304 = vector.broadcast %303 : vector<8x1xf32> to vector<8x128xf32>
    %305 = arith.mulf %295, %304 : vector<8x128xf32>
    %306 = vector.broadcast %212 : vector<1x128xf32> to vector<8x128xf32>
    %307 = arith.mulf %305, %306 : vector<8x128xf32>
    %308 = vector.broadcast %213 : vector<1x128xf32> to vector<8x128xf32>
    %309 = arith.addf %307, %308 : vector<8x128xf32>
    %310 = arith.truncf %309 : vector<8x128xf32> to vector<8x128xbf16>
    %c1_131 = arith.constant 1 : index
    %c0_132 = arith.constant 0 : index
    %c0_133 = arith.constant 0 : index
    %311 = vector.load %arg8[%c1_131, %c0_132, %c0_133] : memref<2x128x256xbf16, #tpu.memory_space<vmem>>, vector<1x128x256xbf16>
    %312 = vector.shape_cast %311 : vector<1x128x256xbf16> to vector<128x256xbf16>
    %cst_134 = arith.constant dense<0.000000e+00> : vector<8x256xf32>
    %313 = tpu.matmul %310, %312, %cst_134 {dimension_numbers = #tpu.dot_dimension_numbers<[1], [0], [0], [1], [0, 0, 1, 1], [], []>} : vector<8x128xbf16>, vector<128x256xbf16>, vector<8x256xf32> -> vector<8x256xf32>
    %314 = vector.broadcast %210 : vector<1x256xf32> to vector<8x256xf32>
    %315 = arith.addf %313, %314 : vector<8x256xf32>
    %316 = arith.mulf %315, %315 : vector<8x256xf32>
    %317 = arith.mulf %315, %316 : vector<8x256xf32>
    %cst_135 = arith.constant 4.471500e-02 : f32
    %318 = vector.broadcast %cst_135 : f32 to vector<8x256xf32>
    %319 = arith.mulf %318, %317 : vector<8x256xf32>
    %320 = arith.addf %315, %319 : vector<8x256xf32>
    %cst_136 = arith.constant 0.797884583 : f32
    %321 = vector.broadcast %cst_136 : f32 to vector<8x256xf32>
    %322 = arith.mulf %321, %320 : vector<8x256xf32>
    %323 = math.tanh %322 : vector<8x256xf32>
    %cst_137 = arith.constant 1.000000e+00 : f32
    %324 = vector.broadcast %cst_137 : f32 to vector<8x256xf32>
    %325 = arith.addf %324, %323 : vector<8x256xf32>
    %cst_138 = arith.constant 5.000000e-01 : f32
    %326 = vector.broadcast %cst_138 : f32 to vector<8x256xf32>
    %327 = arith.mulf %326, %325 : vector<8x256xf32>
    %328 = arith.mulf %315, %327 : vector<8x256xf32>
    %329 = arith.truncf %328 : vector<8x256xf32> to vector<8x256xbf16>
    %c1_139 = arith.constant 1 : index
    %c0_140 = arith.constant 0 : index
    %c0_141 = arith.constant 0 : index
    %330 = vector.load %arg9[%c1_139, %c0_140, %c0_141] : memref<2x256x128xbf16, #tpu.memory_space<vmem>>, vector<1x256x128xbf16>
    %331 = vector.shape_cast %330 : vector<1x256x128xbf16> to vector<256x128xbf16>
    %cst_142 = arith.constant dense<0.000000e+00> : vector<8x128xf32>
    %332 = tpu.matmul %329, %331, %cst_142 {dimension_numbers = #tpu.dot_dimension_numbers<[1], [0], [0], [1], [0, 0, 1, 1], [], []>} : vector<8x256xbf16>, vector<256x128xbf16>, vector<8x128xf32> -> vector<8x128xf32>
    %333 = vector.broadcast %211 : vector<1x128xf32> to vector<8x128xf32>
    %334 = arith.addf %332, %333 : vector<8x128xf32>
    %335 = arith.addf %309, %334 : vector<8x128xf32>
    %cst_143 = arith.constant dense<0.000000e+00> : vector<8xf32>
    %336 = vector.multi_reduction <add>, %335, %cst_143 [1] : vector<8x128xf32> to vector<8xf32>
    %337 = vector.shape_cast %336 : vector<8xf32> to vector<8x1xf32>
    %cst_144 = arith.constant 1.280000e+02 : f32
    %338 = vector.broadcast %cst_144 : f32 to vector<8x1xf32>
    %339 = arith.divf %337, %338 : vector<8x1xf32>
    %340 = vector.broadcast %339 : vector<8x1xf32> to vector<8x128xf32>
    %341 = arith.subf %335, %340 : vector<8x128xf32>
    %342 = arith.mulf %341, %341 : vector<8x128xf32>
    %cst_145 = arith.constant dense<0.000000e+00> : vector<8xf32>
    %343 = vector.multi_reduction <add>, %342, %cst_145 [1] : vector<8x128xf32> to vector<8xf32>
    %344 = vector.shape_cast %343 : vector<8xf32> to vector<8x1xf32>
    %cst_146 = arith.constant 1.280000e+02 : f32
    %345 = vector.broadcast %cst_146 : f32 to vector<8x1xf32>
    %346 = arith.divf %344, %345 : vector<8x1xf32>
    %cst_147 = arith.constant 9.99999996E-13 : f32
    %347 = vector.broadcast %cst_147 : f32 to vector<8x1xf32>
    %348 = arith.addf %346, %347 : vector<8x1xf32>
    %349 = math.rsqrt %348 : vector<8x1xf32>
    %350 = vector.broadcast %349 : vector<8x1xf32> to vector<8x128xf32>
    %351 = arith.mulf %341, %350 : vector<8x128xf32>
    %352 = vector.broadcast %214 : vector<1x128xf32> to vector<8x128xf32>
    %353 = arith.mulf %351, %352 : vector<8x128xf32>
    %354 = vector.broadcast %215 : vector<1x128xf32> to vector<8x128xf32>
    %355 = arith.addf %353, %354 : vector<8x128xf32>
    %356 = vector.extract_strided_slice %355 {offsets = [0, 0], sizes = [1, 128], strides = [1, 1]} : vector<8x128xf32> to vector<1x128xf32>
    %c0_148 = arith.constant 0 : index
    %c0_149 = arith.constant 0 : index
    %c0_150 = arith.constant 0 : index
    %357 = vector.load %arg10[%c0_148, %c0_149, %c0_150] : memref<1x1x128xf32, #tpu.memory_space<vmem>>, vector<1x1x128xf32>
    %358 = vector.shape_cast %357 : vector<1x1x128xf32> to vector<1x128xf32>
    %359 = vector.shape_cast %356 : vector<1x128xf32> to vector<1x1x128xf32>
    tpu.vector_store %arg10[%c0_148, %c0_149, %c0_150], %359 {strides = array<i32>} : memref<1x1x128xf32, #tpu.memory_space<vmem>>, vector<1x1x128xf32>,
    return
  }
  func.func @transform_0(%arg0: i32, %arg1: memref<2x8xi32, #tpu.memory_space<smem>>) -> (i32, i32) {
    %c0_i32 = arith.constant 0 : i32
    %c0_i32_0 = arith.constant 0 : i32
    %c0_i32_1 = arith.constant 0 : i32
    return %c0_i32, %c0_i32_0 : i32, i32
  }
  func.func @transform_1(%arg0: i32, %arg1: memref<2x8xi32, #tpu.memory_space<smem>>) -> (i32, i32) {
    %c0_i32 = arith.constant 0 : i32
    %c0_i32_0 = arith.constant 0 : i32
    %c0_i32_1 = arith.constant 0 : i32
    return %c0_i32, %c0_i32_0 : i32, i32
  }
  func.func @transform_2(%arg0: i32, %arg1: memref<2x8xi32, #tpu.memory_space<smem>>) -> (i32, i32) {
    %c0_i32 = arith.constant 0 : i32
    %c0_i32_0 = arith.constant 0 : i32
    %c0_i32_1 = arith.constant 0 : i32
    return %c0_i32, %c0_i32_0 : i32, i32
  }
  func.func @transform_3(%arg0: i32, %arg1: memref<2x8xi32, #tpu.memory_space<smem>>) -> (i32, i32) {
    %c0_i32 = arith.constant 0 : i32
    %c0_i32_0 = arith.constant 0 : i32
    %c0_i32_1 = arith.constant 0 : i32
    return %c0_i32, %c0_i32_0 : i32, i32
  }
  func.func @transform_4(%arg0: i32, %arg1: memref<2x8xi32, #tpu.memory_space<smem>>) -> (i32, i32, i32) {
    %c0_i32 = arith.constant 0 : i32
    %c0_i32_0 = arith.constant 0 : i32
    %c0_i32_1 = arith.constant 0 : i32
    %c0_i32_2 = arith.constant 0 : i32
    return %c0_i32, %c0_i32_0, %c0_i32_1 : i32, i32, i32
  }
  func.func @transform_5(%arg0: i32, %arg1: memref<2x8xi32, #tpu.memory_space<smem>>) -> (i32, i32, i32) {
    %c0_i32 = arith.constant 0 : i32
    %c0_i32_0 = arith.constant 0 : i32
    %c0_i32_1 = arith.constant 0 : i32
    %c0_i32_2 = arith.constant 0 : i32
    return %c0_i32, %c0_i32_0, %c0_i32_1 : i32, i32, i32
  }
  func.func @transform_6(%arg0: i32, %arg1: memref<2x8xi32, #tpu.memory_space<smem>>) -> (i32, i32, i32) {
    %c0_i32 = arith.constant 0 : i32
    %c0_i32_0 = arith.constant 0 : i32
    %c0_i32_1 = arith.constant 0 : i32
    %c0_i32_2 = arith.constant 0 : i32
    return %c0_i32, %c0_i32_0, %c0_i32_1 : i32, i32, i32
  }
  func.func @transform_7(%arg0: i32, %arg1: memref<2x8xi32, #tpu.memory_space<smem>>) -> (i32, i32, i32) {
    %c0_i32 = arith.constant 0 : i32
    %c0_i32_0 = arith.constant 0 : i32
    %c0_i32_1 = arith.constant 0 : i32
    %c0_i32_2 = arith.constant 0 : i32
    return %c0_i32, %c0_i32_0, %c0_i32_1 : i32, i32, i32
  }
  func.func @transform_8(%arg0: i32, %arg1: memref<2x8xi32, #tpu.memory_space<smem>>) -> (i32, i32, i32) {
    %c0_i32 = arith.constant 0 : i32
    %c0_i32_0 = arith.constant 0 : i32
    %c0_i32_1 = arith.constant 0 : i32
    return %arg0, %c0_i32, %c0_i32_0 : i32, i32, i32
  }
}

</mosaic_0001>

<bundles_post_ra>
// kernel: tpu_custom_call.1
= control target key start
LH: loop header
LB: loop body
LE: loop exit
PB: predicated region body
PF: predicated region fallthrough
CT: control target
= control target key end

     0   :  { %s4984_s0 = inlined_call_operand.hbm [shape: s32[2,8], index: 0, kind: input, shape index: {}]   ;;  %s4985_s1 = inlined_call_operand.hbm [shape: f32[50,128], index: 1, kind: input, shape index: {}]   ;;  %s4986_s2 = inlined_call_operand.hbm [shape: f32[8,128], index: 2, kind: input, shape index: {}]   ;;  %s4987_s3 = inlined_call_operand.vmem [shape: f32[1,128], index: 3, kind: input, shape index: {}]   ;;  %s4988_s4 = inlined_call_operand.hbm [shape: f32[18,384], index: 4, kind: input, shape index: {}]   ;;  %s4989_s5 = inlined_call_operand.hbm [shape: bf16[2,128,384], index: 5, kind: input, shape index: {}]   ;;  %s4990_s6 = inlined_call_operand.hbm [shape: bf16[8,32,128], index: 6, kind: input, shape index: {}]   ;;  %s4991_s7 = inlined_call_operand.hbm [shape: bf16[2,128,256], index: 7, kind: input, shape index: {}]   ;;  %s4992_s8 = inlined_call_operand.hbm [shape: bf16[2,256,128], index: 8, kind: input, shape index: {}]   ;;  %s4993_s9 = inlined_call_operand.hbm [shape: f32[2,1,128], index: 9, kind: output, shape index: {}]  }
   0x1   :  { %5000 = sst [smem:[#allocation26_spill]] %s4986_s2  ;;  %s4097_s11 = scalar_lea.hbm %s4984_s0, 32 }
   0x2   :  { %p4098_p0 = scmp.ne.s32.totalorder %s4984_s0, %s4097_s11  ;;  %p4101_p1 = scmp.lt.u32.totalorder %s4097_s11, %s4984_s0 }
   0x4   :  { %p4103_p2 = pnand %p4101_p1, %p4098_p0 }
   0x6   :  { %4106 = shalt.err (!%p4103_p2)  }
   0x7   :  { %s4385_s16 = smov [#allocation3]  }
   0x8   :  { %15 = dma.hbm_to_smem %s4984_s0, 32, %s4385_s16, [#allocation2] }
   0x9   :  { %4347 = dma.done.wait [#allocation2], 32 }
   0xa   :  { %4348 = vsyncadd [#allocation2], 4294967264 }
   0xb   :  { %17 = sfence }
   0xc   :  { %18 = vsyncpa [#allocation5], 0 }
   0xd   :  { %19 = vsyncpa [#allocation8], 0 }
   0xe   :  { %20 = vsyncpa [#allocation11], 0 }
   0xf   :  { %21 = vsyncpa [#allocation14], 0 }
  0x10   :  { %22 = vsyncpa [#allocation6], 0 }
  0x11   :  { %24 = vsyncpa [#allocation6 + $0x1], 0  ;;  %s4470_s19 = smov 0   ;;  %s4472_s20 = smov 0  }
  0x12   :  { %s4474_s21 = smov 0   ;;  %s4476_s22 = smov 0  }
  0x13 LB: > { %5001 = sst [smem:[#allocation23_spill]] %s4379_s21  ;;  %s4491_s0 = sadd.s32 4294967295, %s4383_s22   ;;  %s4383_s22 = sphi %s4476_s22, %s5021_s22   ;;  %s4379_s21 = sphi %s4474_s21, %s5023_s21   ;;  %s4375_s20 = sphi %s4472_s20, %s5025_s20   ;;  %s4371_s19 = sphi %s4470_s19, %s5024_s19  }
  0x14   : > { %s3270_s23 = sadd.s32 4294967294, %s4383_s22   ;;  %s4495_s24 = sadd.s32 1, %s4383_s22  }
  0x15   : > { %5002 = sst [smem:[#allocation24_spill]] %s4495_s24  ;;  %s205_s25 = sadd.s32 1, %s4379_s21 }
  0x16   : > { %s202_s26 = ssub.s32 %s4383_s22, %s4495_s24  ;;  %p215_p3 = scmp.ne.s32.totalorder %s4379_s21, %s4375_s20 }
  0x17   : > { %p203_p4 = scmp.eq.s32.totalorder %s202_s26, 0  ;;  %p216_p5 = scmp.eq.s32.totalorder %s4491_s0, 1 }
  0x18   : > { %p221_p6 = scmp.ne.s32.totalorder %s4375_s20, %s4371_s19  ;;  %p222_p7 = scmp.eq.s32.totalorder %s3270_s23, 1 }
  0x19   : > { %s4506_s27 = scalar_select %p203_p4, %s4379_s21, %s205_s25  }
  0x1a   : > { %p4508_p8 = por %p216_p5, %p215_p3  ;;  %p4512_p9 = por %p222_p7, %p221_p6 }
  0x1b   : > { %5003 = sst [smem:[#allocation25_spill]] %s4506_s27  ;;  %p3271_p10 = scmp.ge.s32.totalorder %s4383_s22, 1 }
  0x1c   : > { %s5004_s28 = scalar_select %p4508_p8, 1, 0 }
  0x1d   : > { %s5005_s29 = scalar_select %p4512_p9, 1, 0 }
  0x1e   : > { %p229_p11 = scmp.lt.s32.totalorder %s4383_s22, 3  ;;  %p4994_p12 = scmp.eq.s32.totalorder %s4491_s0, 0 }
  0x1f   : > { %s4386_s10 = smov [#allocation7]   ;;  %s4387_s12 = smov [#allocation10]  }
  0x20   : > { %p4519_p13 = pnand %p3271_p10, %p229_p11  ;;  %s255_s11 = sshll.u32 %s4386_s10, 4  ;;  %s256_s11 = int_to_ptr.vmem [resolvable:$true] %s255_s11 }
  0x21   : > { %s281_s13 = sshll.u32 %s4387_s12, 4  ;;  %s5008_s2 = sld [smem:[#allocation26_spill]]  ;;  %s4531_s13 = int_to_ptr.vmem [resolvable:$true] %s281_s13 }
  0x22   : > { %s5006_s30 = scalar_select %p4519_p13, 1, 0 }
  0x23   : > { %p3792_p0 = pneg %p4519_p13 }
  0x25   : > { %p4527_p1 = pnand %p4994_p12, %p3792_p0 }
  0x27   : > { %s4107_s17 = scalar_lea.hbm %s5008_s2, 128  ;;  %p4541_p3 = pneg %p4527_p1 }
  0x28   : > { %p4108_p2 = scmp.ne.s32.totalorder %s5008_s2, %s4107_s17  ;;  %p4114_p6 = scmp.lt.u32.totalorder %s4107_s17, %s5008_s2 }
  0x2a   : > { %p4110_p4 = pnand %p4541_p3, %p4108_p2 }
  0x2c   : > { %p4111_p5 = pneg %p4110_p4 }
  0x2e   : > { %p4116_p7 = pnand %p4114_p6, %p4111_p5 }
  0x30   : > { %4119 = shalt.err (!%p4116_p7)
}
  0x31   : > { %s4120_s12 = scalar_lea.vmem %s256_s11, 128  ;;  %p4128_p12 = scmp.lt.s32.totalorder %s256_s11, %s256_s11 }
  0x32   : > { %p4121_p10 = scmp.ne.s32.totalorder %s256_s11, %s4120_s12  ;;  %p4129_p9 = scmp.lt.s32.totalorder %s4120_s12, %s4120_s12 }
  0x34   : > { %p4123_p11 = pnand %p4121_p10, %p4541_p3  ;;  %p4130_p8 = por %p4129_p9, %p4128_p12 }
  0x36   : > { %p4124_p0 = pneg %p4123_p11 }
  0x38   : > { %p4131_p13 = pnand %p4130_p8, %p4124_p0 }
  0x3a   : > { %4134 = shalt.err (!%p4131_p13)
}
  0x3b   : > { %3798 = dma.hbm_to_vmem [thread:$0]  (!%p4527_p1), %s5008_s2, 128, %s256_s11, [#allocation8]  }
  0x3c   : > { %s4135_s23 = scalar_lea.hbm %s4989_s5, 6144 }
  0x3d   : > { %p4136_p2 = scmp.ne.s32.totalorder %s4989_s5, %s4135_s23  ;;  %p4142_p8 = scmp.lt.u32.totalorder %s4135_s23, %s4989_s5 }
  0x3f   : > { %p4138_p4 = pnand %p4136_p2, %p4541_p3 }
  0x41   : > { %p4139_p9 = pneg %p4138_p4 }
  0x43   : > { %p4144_p12 = pnand %p4142_p8, %p4139_p9 }
  0x45   : > { %4147 = shalt.err (!%p4144_p12)
}
  0x46   : > { %s4148_s11 = scalar_lea.vmem %s4531_s13, 6144  ;;  %p4156_p7 = scmp.lt.s32.totalorder %s4531_s13, %s4531_s13 }
  0x47   : > { %p4149_p13 = scmp.ne.s32.totalorder %s4531_s13, %s4148_s11  ;;  %p4157_p10 = scmp.lt.s32.totalorder %s4148_s11, %s4148_s11 }
  0x49   : > { %p4151_p5 = pnand %p4149_p13, %p4541_p3  ;;  %p4158_p11 = por %p4157_p10, %p4156_p7 }
  0x4b   : > { %p4152_p6 = pneg %p4151_p5 }
  0x4d   : > { %p4159_p0 = pnand %p4158_p11, %p4152_p6 }
  0x4f   : > { %4162 = shalt.err (!%p4159_p0)
}
  0x50   : > { %s4388_s15 = smov 192   ;;  %s4389_s27 = smov 12  }
  0x51   : > { %3804 = dma.hbm_to_vmem [thread:$0]  (!%p4527_p1), %s4989_s5, 6144, %s4531_s13, [#allocation11], %s4388_s15, %s4388_s15, %s4389_s27  }
  0x52   : > { %s4390_s18 = smov [#allocation13]   ;;  %s4391_s26 = smov [#allocation4]  }
  0x53   : > { %s307_s23 = sshll.u32 %s4390_s18, 4  ;;  %s241_s10 = sshll.u32 %s4391_s26, 4  ;;  %s308_s23 = int_to_ptr.vmem [resolvable:$true] %s307_s23  ;;  %s4580_s10 = int_to_ptr.vmem [resolvable:$true] %s241_s10 }
  0x54   : > { %s4163_s2 = scalar_lea.hbm %s4991_s7, 4096 }
  0x55   : > { %p4164_p2 = scmp.ne.s32.totalorder %s4991_s7, %s4163_s2  ;;  %p4170_p8 = scmp.lt.u32.totalorder %s4163_s2, %s4991_s7 }
  0x57   : > { %p4166_p4 = pnand %p4164_p2, %p4541_p3 }
  0x59   : > { %p4167_p9 = pneg %p4166_p4 }
  0x5b   : > { %p4172_p12 = pnand %p4170_p8, %p4167_p9 }
  0x5d   : > { %4175 = shalt.err (!%p4172_p12)
}
  0x5e   : > { %s4176_s15 = scalar_lea.vmem %s308_s23, 4096  ;;  %p4184_p7 = scmp.lt.s32.totalorder %s308_s23, %s308_s23 }
  0x5f   : > { %p4177_p13 = scmp.ne.s32.totalorder %s308_s23, %s4176_s15  ;;  %p4185_p10 = scmp.lt.s32.totalorder %s4176_s15, %s4176_s15 }
  0x61   : > { %p4179_p5 = pnand %p4177_p13, %p4541_p3  ;;  %p4186_p11 = por %p4185_p10, %p4184_p7 }
  0x63   : > { %p4180_p6 = pneg %p4179_p5 }
  0x65   : > { %p4187_p0 = pnand %p4186_p11, %p4180_p6 }
  0x67   : > { %4190 = shalt.err (!%p4187_p0)
}
  0x68   : > { %s4392_s21 = smov 128   ;;  %s4393_s24 = smov 8  }
  0x69   : > { %3810 = dma.hbm_to_vmem [thread:$0]  (!%p4527_p1), %s4991_s7, 4096, %s308_s23, [#allocation14], %s4392_s21, %s4392_s21, %s4393_s24  }
  0x6a   : > { %s4191_s26 = scalar_lea.hbm %s4985_s1, 896 }
  0x6b   : > { %p4192_p2 = scmp.ne.s32.totalorder %s4985_s1, %s4191_s26  ;;  %p4198_p8 = scmp.lt.u32.totalorder %s4191_s26, %s4985_s1 }
  0x6d   : > { %p4194_p4 = pnand %p4192_p2, %p4541_p3 }
  0x6f   : > { %p4195_p9 = pneg %p4194_p4 }
  0x71   : > { %p4200_p12 = pnand %p4198_p8, %p4195_p9 }
  0x73   : > { %4203 = shalt.err (!%p4200_p12)
}
  0x74   : > { %s4204_s23 = scalar_lea.vmem %s4580_s10, 896  ;;  %p4212_p7 = scmp.lt.s32.totalorder %s4580_s10, %s4580_s10 }
  0x75   : > { %p4205_p13 = scmp.ne.s32.totalorder %s4580_s10, %s4204_s23  ;;  %p4213_p10 = scmp.lt.s32.totalorder %s4204_s23, %s4204_s23 }
  0x77   : > { %p4207_p5 = pnand %p4205_p13, %p4541_p3  ;;  %p4214_p11 = por %p4213_p10, %p4212_p7 }
  0x79   : > { %p4208_p6 = pneg %p4207_p5 }
  0x7b   : > { %p4215_p0 = pnand %p4214_p11, %p4208_p6 }
  0x7d   : > { %4218 = shalt.err (!%p4215_p0)
}
  0x7e   : > { %3795 = dma.hbm_to_vmem [thread:$0]  (!%p4527_p1), %s4985_s1, 896, %s4580_s10, [#allocation5], %s4392_s21, %s4392_s21, %s4393_s24  }
  0x7f   : > { %s4394_s2 = smov [#allocation9]   ;;  %s4219_s12 = scalar_lea.hbm %s4988_s4, 1152 }
  0x80   : > { %s268_s17 = sshll.u32 %s4394_s2, 4  ;;  %p4220_p2 = scmp.ne.s32.totalorder %s4988_s4, %s4219_s12  ;;  %s269_s17 = int_to_ptr.vmem [resolvable:$true] %s268_s17 }
  0x81   : > { %p4226_p8 = scmp.lt.u32.totalorder %s4219_s12, %s4988_s4 }
  0x82   : > { %p4222_p4 = pnand %p4220_p2, %p4541_p3 }
  0x84   : > { %p4223_p9 = pneg %p4222_p4 }
  0x86   : > { %p4228_p12 = pnand %p4226_p8, %p4223_p9 }
  0x88   : > { %4231 = shalt.err (!%p4228_p12)
}
  0x89   : > { %s4232_s10 = scalar_lea.vmem %s269_s17, 1152  ;;  %p4240_p7 = scmp.lt.s32.totalorder %s269_s17, %s269_s17 }
  0x8a   : > { %p4233_p13 = scmp.ne.s32.totalorder %s269_s17, %s4232_s10  ;;  %p4241_p10 = scmp.lt.s32.totalorder %s4232_s10, %s4232_s10 }
  0x8c   : > { %p4235_p5 = pnand %p4233_p13, %p4541_p3  ;;  %p4242_p11 = por %p4241_p10, %p4240_p7 }
  0x8e   : > { %p4236_p6 = pneg %p4235_p5 }
  0x90   : > { %p4243_p0 = pnand %p4242_p11, %p4236_p6 }
  0x92   : > { %4246 = shalt.err (!%p4243_p0)
}
  0x93   : > { %s4395_s21 = smov 384   ;;  %s4396_s24 = smov 24  }
  0x94   : > { %3801 = dma.hbm_to_vmem [thread:$0]  (!%p4527_p1), %s4988_s4, 1152, %s269_s17, [#allocation8], %s4395_s21, %s4395_s21, %s4396_s24  }
  0x95   : > { %s4397_s2 = smov [#allocation12]   ;;  %s4247_s11 = scalar_lea.hbm %s4990_s6, 2048 }
  0x96   : > { %s294_s18 = sshll.u32 %s4397_s2, 4  ;;  %p4248_p2 = scmp.ne.s32.totalorder %s4990_s6, %s4247_s11  ;;  %s295_s18 = int_to_ptr.vmem [resolvable:$true] %s294_s18 }
  0x97   : > { %p4254_p8 = scmp.lt.u32.totalorder %s4247_s11, %s4990_s6 }
  0x98   : > { %p4250_p4 = pnand %p4248_p2, %p4541_p3 }
  0x9a   : > { %p4251_p9 = pneg %p4250_p4 }
  0x9c   : > { %p4256_p12 = pnand %p4254_p8, %p4251_p9 }
  0x9e   : > { %4259 = shalt.err (!%p4256_p12)
}
  0x9f   : > { %s4260_s17 = scalar_lea.vmem %s295_s18, 2048  ;;  %p4268_p7 = scmp.lt.s32.totalorder %s295_s18, %s295_s18 }
  0xa0   : > { %p4261_p13 = scmp.ne.s32.totalorder %s295_s18, %s4260_s17  ;;  %p4269_p10 = scmp.lt.s32.totalorder %s4260_s17, %s4260_s17 }
  0xa2   : > { %p4263_p5 = pnand %p4261_p13, %p4541_p3  ;;  %p4270_p11 = por %p4269_p10, %p4268_p7 }
  0xa4   : > { %p4264_p6 = pneg %p4263_p5 }
  0xa6   : > { %p4271_p0 = pnand %p4270_p11, %p4264_p6 }
  0xa8   : > { %4274 = shalt.err (!%p4271_p0)
}
  0xa9   : > { %s4398_s21 = smov 64   ;;  %s4399_s24 = smov 4  }
  0xaa   : > { %3807 = dma.hbm_to_vmem [thread:$0]  (!%p4527_p1), %s4990_s6, 2048, %s295_s18, [#allocation11], %s4398_s21, %s4398_s21, %s4399_s24  }
  0xab   : > { %s4400_s2 = smov [#allocation15]   ;;  %s4275_s16 = scalar_lea.hbm %s4992_s8, 4096 }
  0xac   : > { %s320_s26 = sshll.u32 %s4400_s2, 4  ;;  %p4276_p2 = scmp.ne.s32.totalorder %s4992_s8, %s4275_s16  ;;  %s321_s26 = int_to_ptr.vmem [resolvable:$true] %s320_s26 }
  0xad   : > { %p4282_p8 = scmp.lt.u32.totalorder %s4275_s16, %s4992_s8 }
  0xae   : > { %p4278_p4 = pnand %p4276_p2, %p4541_p3 }
  0xb0   : > { %p4279_p9 = pneg %p4278_p4 }
  0xb2   : > { %p4284_p12 = pnand %p4282_p8, %p4279_p9 }
  0xb4   : > { %4287 = shalt.err (!%p4284_p12)
}
  0xb5   : > { %s4288_s18 = scalar_lea.vmem %s321_s26, 4096  ;;  %p4296_p7 = scmp.lt.s32.totalorder %s321_s26, %s321_s26 }
  0xb6   : > { %p4289_p13 = scmp.ne.s32.totalorder %s321_s26, %s4288_s18  ;;  %p4297_p10 = scmp.lt.s32.totalorder %s4288_s18, %s4288_s18 }
  0xb8   : > { %p4291_p5 = pnand %p4289_p13, %p4541_p3  ;;  %p4298_p11 = por %p4297_p10, %p4296_p7 }
  0xba   : > { %p4292_p6 = pneg %p4291_p5 }
  0xbc   : > { %p4299_p0 = pnand %p4298_p11, %p4292_p6 }
  0xbe   : > { %4302 = shalt.err (!%p4299_p0)
}
  0xbf   : > { %3813 = dma.hbm_to_vmem [thread:$0]  (!%p4527_p1), %s4992_s8, 4096, %s321_s26, [#allocation14], %s4398_s21, %s4398_s21, %s4399_s24  }
  0xc0   : > { %p5010_p2 = scmp.ne.s32.totalorder %s5006_s30, 0 }
  0xc1   : > { %p5011_p4 = scmp.eq.s32.totalorder (!%p5010_p2), %s4491_s0, 0 }
  0xc2   : > { %336 = sbr.rel (%p5010_p2) target bundleno = 5410 (0x1522), region = 52 }
  0xc9   : > { %4350 = dma.done.wait (%p5011_p4), [#allocation5], 896   ;;  %p5012_p3 = pmov %p5011_p4 }
  0xcb   : > { %4352 = vsyncadd (%p5012_p3), [#allocation5], 4294966400  ;;  %p5013_p9 = pmov %p5012_p3 }
  0xcc   : > { %p5014_p8 = pmov %p5012_p3 }
  0xcd   : > { %4354 = dma.done.wait (%p5013_p9), [#allocation8], 1280  }
  0xce   : > { %4356 = vsyncadd (%p5014_p8), [#allocation8], 4294966016  ;;  %p5015_p12 = pmov %p5012_p3 }
  0xcf   : > { %p5016_p1 = pmov %p5012_p3 }
  0xd0   : > { %4358 = dma.done.wait (%p5015_p12), [#allocation11], 8192  }
  0xd1   : > { %4360 = vsyncadd (%p5016_p1), [#allocation11], 4294959104  ;;  %p5017_p13 = pmov %p5016_p1 }
  0xd2   : > { %p5018_p5 = pmov %p5016_p1 }
  0xd3   : > { %4362 = dma.done.wait (%p5017_p13), [#allocation14], 8192  }
  0xd4   : > { %4364 = vsyncadd (%p5018_p5), [#allocation14], 4294959104  ;;  %s3287_s30 = sshll.u32 %s4491_s0, 7  ;;  %vm442_vm0 = vcmask 1040384   ;;  %vm444_vm1 = vcmask 1041408   ;;  %vm446_vm2 = vcmask 1042432  }
  0xd5   : > { %s390_s14 = sld [smem:[#allocation3 + %s3287_s30]]  ;;  %s393_s25 = sadd.s32 1, %s3287_s30  ;;  %vm448_vm3 = vcmask 1043456   ;;  %vm450_vm4 = vcmask 1044480   ;;  %vm452_vm5 = vcmask 1045504   ;;  %vm454_vm6 = vcmask 1046528  }
  0xd6   : > { %s394_s21 = sld [smem:[#allocation3 + %s393_s25]]  ;;  %s397_s24 = sadd.s32 2, %s3287_s30  ;;  %v456_v17 = vld [vmem:[#allocation7] sm:$0xff]  ;;  %v3288_v22 = vld [vmem:[%s4987_s3] ss:$0 sm:$0xff]  ;;  %v4401_v28 = vmov 0.0  }
  0xd7   : > { %s398_s2 = sld [smem:[#allocation3 + %s397_s24]]  ;;  %s401_s26 = sadd.s32 3, %s3287_s30  ;;  %v3887_v26 = vld [vmem:[#allocation10 + $0x4] ss:$12 sps:$4 sm:$0xff]   ;;  %v3889_v27 = vld [vmem:[#allocation10] ss:$12 sps:$4 sm:$0xff]   ;;  %3562 = vmatprep.subr.bf16.mxu1 %v4401_v28 }
  0xd8   : > { %s402_s12 = sld [smem:[#allocation3 + %s401_s26]]  ;;  %s405_s11 = sadd.s32 4, %s3287_s30  ;;  %v3890_v29 = vld [vmem:[#allocation10 + $0x8] ss:$12 sps:$4 sm:$0xff]   ;;  %v3893_v31 = vld [vmem:[#allocation10 + $0x18] ss:$12 sps:$4 sm:$0xff]   ;;  %669 = vmatprep.subr.bf16.mxu0 %v3887_v26 }
  0xd9   : > { %s406_s16 = sld [smem:[#allocation3 + %s405_s11]]  ;;  %s409_s13 = sadd.s32 5, %s3287_s30  ;;  %v3891_v30 = vld [vmem:[#allocation10 + $0x1c] ss:$12 sps:$4 sm:$0xff]   ;;  %v3894_v32 = vld [vmem:[#allocation10 + $0x20] ss:$12 sps:$4 sm:$0xff]   ;;  %670 = vmatpush1.bf16.msra.mxu0 %v3889_v27  ;;  %3563 = vmatpush3.bf16.msra.mxu1 %v3890_v29 }
  0xda   : > { %s410_s23 = sld [smem:[#allocation3 + %s409_s13]]  ;;  %s413_s10 = sadd.s32 6, %s3287_s30  ;;  %v3895_v33 = vld [vmem:[#allocation10 + $0x34] ss:$12 sps:$4 sm:$0xff]   ;;  %671 = vmatprep.subr.bf16.mxu0 %v3891_v30  ;;  %3564 = vmatprep.subr.bf16.mxu1 %v4401_v28  ;;  %v3897_v38 = vld [vmem:[#allocation10 + $0x30] ss:$12 sps:$4 sm:$0xff]  }
  0xdb   : > { %s414_s17 = sld [smem:[#allocation3 + %s413_s10]]  ;;  %s391_s18 = scalar_lea.vmem [#allocation4], %s390_s14  ;;  %v3898_v39 = vld [vmem:[#allocation10 + $0x38] ss:$12 sps:$4 sm:$0xff]   ;;  %v3901_v41 = vld [vmem:[#allocation10 + $0x48] ss:$12 sps:$4 sm:$0xff]  }
  0xdc   : > { %v392_v0 = vld [vmem:[%s391_s18] sm:$0x1]  ;;  %s417_s15 = sadd.s32 7, %s3287_s30  ;;  %s395_s27 = scalar_lea.vmem [#allocation4], %s394_s21  ;;  %v3902_v42 = vld [vmem:[#allocation10 + $0x50] ss:$12 sps:$4 sm:$0xff]  }
  0xdd   : > { %v396_v1 = vld [vmem:[%s395_s27] sm:$0x1]  ;;  %s418_s25 = sld [smem:[#allocation3 + %s417_s15]]  ;;  %s399_s24 = scalar_lea.vmem [#allocation4], %s398_s2  ;;  %672 = vmatpush1.bf16.msra.mxu0 %v3893_v31  ;;  %3565 = vmatpush3.bf16.msra.mxu1 %v3894_v32  ;;  %v3903_v43 = vld [vmem:[#allocation10 + $0x64] ss:$12 sps:$4 sm:$0xff]  }
  0xde   : > { %v400_v2 = vld [vmem:[%s399_s24] sm:$0x1]  ;;  %v422_v3 = vrot.slane %v396_v1, 7  ;;  %s403_s26 = scalar_lea.vmem [#allocation4], %s402_s12  ;;  %673 = vmatprep.subr.bf16.mxu0 %v3895_v33  ;;  %3566 = vmatprep.subr.bf16.mxu1 %v4401_v28  ;;  %v3905_v44 = vld [vmem:[#allocation10 + $0x60] ss:$12 sps:$4 sm:$0xff]  }
  0xdf   : > { %v404_v4 = vld [vmem:[%s403_s26] sm:$0x1]  ;;  %v425_v5 = vrot.slane %v400_v2, 6  ;;  %s407_s11 = scalar_lea.vmem [#allocation4], %s406_s16  ;;  %v3906_v45 = vld [vmem:[#allocation10 + $0x68] ss:$12 sps:$4 sm:$0xff]   ;;  %v526_v2 = vlaneseq }
  0xe0   : > { %v408_v6 = vld [vmem:[%s407_s11] sm:$0x1]  ;;  %v428_v7 = vrot.slane %v404_v4, 5  ;;  %v443_v8 = vsel %vm442_vm0, %v392_v0, %v422_v3  ;;  %s411_s13 = scalar_lea.vmem [#allocation4], %s410_s23  ;;  %v3907_v46 = vld [vmem:[#allocation10 + $0x7c] ss:$12 sps:$4 sm:$0xff]  }
  0xe1   : > { %v412_v9 = vld [vmem:[%s411_s13] sm:$0x1]  ;;  %v431_v10 = vrot.slane %v408_v6, 4  ;;  %v445_v11 = vsel %vm444_vm1, %v443_v8, %v425_v5  ;;  %s415_s30 = scalar_lea.vmem [#allocation4], %s414_s17  ;;  %674 = vmatpush1.bf16.msra.mxu0 %v3897_v38  ;;  %3567 = vmatpush3.bf16.msra.mxu1 %v3898_v39  ;;  %v3910_v48 = vld [vmem:[#allocation10 + $0x80] ss:$12 sps:$4 sm:$0xff]  }
  0xe2   : > { %v416_v12 = vld [vmem:[%s415_s30] sm:$0x1]  ;;  %v434_v13 = vrot.slane %v412_v9, 3  ;;  %v447_v14 = vsel %vm446_vm2, %v445_v11, %v428_v7  ;;  %3568 = vmatprep.subr.bf16.mxu1 %v4401_v28  ;;  %v3911_v49 = vld [vmem:[#allocation10 + $0x94] ss:$12 sps:$4 sm:$0xff]   ;;  %v4402_v50 = vmov 0  }
  0xe3   : > { %v437_v15 = vrot.slane %v416_v12, 2  ;;  %v449_v16 = vsel %vm448_vm3, %v447_v14, %v431_v10  ;;  %s419_s14 = scalar_lea.vmem [#allocation4], %s418_s25  ;;  %v3899_v40 = vld [vmem:[#allocation10 + $0x4c] ss:$12 sps:$4 sm:$0xff]   ;;  %701 = vmatprep.mubr.bf16.mxu0 %v4402_v50  ;;  %vm4403_vm7 = vmmov 0   ;;  %v4727_v3 = vshrl.u32 %v526_v2, 7 }
  0xe4   : > { %v420_v18 = vld [vmem:[%s419_s14] sm:$0x1]  ;;  %v451_v19 = vsel %vm450_vm4, %v449_v16, %v434_v13  ;;  %675 = vmatprep.subr.bf16.mxu0 %v3899_v40  ;;  %3578 = vmatprep.mubr.msk.bf16.mxu1 %vm4403_vm7, %v4401_v28  ;;  %v3913_v51 = vld [vmem:[#allocation10 + $0x90] ss:$12 sps:$4 sm:$0xff]   ;;  %v3917_v54 = vld [vmem:[#allocation10 + $0xa8] ss:$12 sps:$4 sm:$0xff]  }
  0xe5   : > { %v440_v20 = vrot.slane %v420_v18, 1  ;;  %v453_v21 = vsel %vm452_vm5, %v451_v19, %v437_v15  ;;  %676 = vmatpush1.bf16.msra.mxu0 %v3901_v41  ;;  %3569 = vmatpush3.bf16.msra.mxu1 %v3902_v42  ;;  %v3909_v47 = vld [vmem:[#allocation10 + $0x78] ss:$12 sps:$4 sm:$0xff]   ;;  %v3918_v55 = vld [vmem:[#allocation10 + $0xb0] ss:$12 sps:$4 sm:$0xff]   ;;  %v4730_v4 = vsub.s32 1, %v4727_v3 }
  0xe6   : > { %3570 = vmatprep.subr.bf16.mxu1 %v4401_v28  ;;  %677 = vmatprep.subr.bf16.mxu0 %v3903_v43  ;;  %v3914_v52 = vld [vmem:[#allocation10 + $0x98] ss:$12 sps:$4 sm:$0xff]   ;;  %v4733_v6 = vsub.s32 0, %v4727_v3  ;;  %vm753_vm8 = vcmask 261120   ;;  %s4404_s12 = smov 64   ;;  %s4405_s16 = smov 96  }
  0xe7   : > { %v455_v23 = vsel %vm454_vm6, %v453_v21, %v440_v20  ;;  %v3915_v53 = vld [vmem:[#allocation10 + $0xac] ss:$12 sps:$4 sm:$0xff]   ;;  %s4406_s23 = smov 32   ;;  %vm956_vm9 = vcmask 64512   ;;  %s386_s10 = sand.u32 1, %s4375_s20  }
  0xe8   : > { %v457_v24 = vadd.f32 %v456_v17, %v455_v23  ;;  %v466_v60 = vld [vmem:[#allocation9] ss:$0 sm:$0xff]  ;;  %v467_v62 = vld [vmem:[#allocation9 + $0x1] ss:$0 sm:$0xff]  ;;  %s3441_s17 = sshll.u32 %s4491_s0, 4  ;;  %s387_s18 = scalar_lea.vmem [#allocation16], %s386_s10 }
  0xe9   : > { %678 = vmatpush1.bf16.msra.mxu0 %v3905_v44  ;;  %3571 = vmatpush3.bf16.msra.mxu1 %v3906_v45  ;;  %v483_v5 = vld [vmem:[#allocation9 + $0x2] ss:$8 sm:$0x7]  ;;  %s3150_s15 = sshll.u32 %s387_s18, 4  ;;  %s4942_s24 = scalar_lea.hbm %s4993_s9, %s3441_s17  ;;  %s4944_s15 = int_to_ptr.vmem [resolvable:$true] %s3150_s15 }
  0xea   : > { %v465_v25 = vadd.f32 %v3288_v22, %v457_v24  ;;  %679 = vmatprep.subr.bf16.mxu0 %v3907_v46  ;;  %3572 = vmatprep.subr.bf16.mxu1 %v4401_v28  ;;  %v533_v7 = vrot.slane %v483_v5, %v4730_v4  ;;  %v529_v8 = vrot.slane %v483_v5, %v4733_v6  ;;  %v536_v22 = vsub.s32 2, %v4727_v3  ;;  %s3138_s26 = scalar_lea.sflag [#allocation6], %s386_s10  ;;  %s4303_s11 = scalar_lea.vmem %s4944_s15, 16 }
  0xeb   : > { %p4304_p6 = scmp.ne.s32.totalorder %s4944_s15, %s4303_s11  ;;  %p5019_p7 = scmp.ne.s32.totalorder %s5004_s28, 0 }
  0xec   : > { %468 = vadd.xlane.f32.xlu0 %v465_v25  ;;  %v537_v23 = vrot.slane %v483_v5, %v536_v22  ;;  %s4407_s0 = smov [#allocation16]  }
  0xed   : > { %680 = vmatpush1.bf16.msra.mxu0 %v3909_v47  ;;  %3573 = vmatpush3.bf16.msra.mxu1 %v3910_v48  ;;  %p4305_p10 = pnand %p4304_p6, %p5019_p7  ;;  %s4307_s13 = sshll.u32 %s4407_s0, 4  ;;  %s4308_s13 = int_to_ptr.vmem [resolvable:$false] %s4307_s13 }
  0xee   : > { %681 = vmatprep.subr.bf16.mxu0 %v3911_v49  ;;  %3574 = vmatprep.subr.bf16.mxu1 %v4401_v28  ;;  %s4309_s30 = scalar_lea.vmem %s4308_s13, 32  ;;  %p4310_p0 = scmp.lt.s32.totalorder %s4944_s15, %s4308_s13 }
  0xef   : > { %p4306_p11 = pneg %p4305_p10  ;;  %p4311_p2 = scmp.lt.s32.totalorder %s4309_s30, %s4303_s11 }
  0xf1   : > { %682 = vmatpush1.bf16.msra.mxu0 %v3913_v51  ;;  %3575 = vmatpush3.bf16.msra.mxu1 %v3914_v52  ;;  %p4312_p4 = por %p4311_p2, %p4310_p0 }
  0xf2   : > { %683 = vmatprep.subr.bf16.mxu0 %v3915_v53  ;;  %3576 = vmatprep.subr.bf16.mxu1 %v4401_v28 }
  0xf3   : > { %p4313_p3 = pnand %p4312_p4, %p4306_p11 }
  0xf5   : > { %684 = vmatpush1.bf16.msra.mxu0 %v3917_v54  ;;  %3577 = vmatpush3.bf16.msra.mxu1 %v3918_v55 }
  0xf6   : > { %3582 = vmatprep.subr.bf16.mxu0 %v4401_v28  ;;  %3588 = vmatprep.subr.bf16.mxu1 %v4401_v28 }
 0x179   : > { %v469_v34 = vpop.xlane.xlu0 %468 }
 0x17a   : > { %v471_v35 = vmul.f32 0.0078125, %v469_v34 }
 0x17c   : > { %v472_v36 = vsub.f32 %v465_v25, %v471_v35 }
 0x17e   : > { %v473_v37 = vmul.f32 %v472_v36, %v472_v36 }
 0x180   : > { %474 = vadd.xlane.f32.xlu0 %v473_v37 }
 0x20d   : > { %v475_v56 = vpop.xlane.xlu0 %474 }
 0x20e   : > { %v476_v57 = vmul.f32 0.0078125, %v475_v56 }
 0x210   : > { %v477_v58 = vadd.f32 1e-12, %v476_v57 }
 0x212   : > { %4047 = vrsqrt.f32 %v477_v58 }
 0x21c   : > { %v4048_v59 = vpop.eup %4047 }
 0x21d   : > { %v479_v61 = vmul.f32 %v4048_v59, %v472_v36 }
 0x21f   : > { %v480_v63 = vmul.f32 %v479_v61, %v466_v60 }
 0x221   : > { %v4719_v0 = vadd.f32 %v480_v63, %v467_v62 }
 0x223   : > { %v492_v1 = vpack.c.bf16 %v4719_v0, %v4719_v0 }
 0x225   : > { %702 = vmatmul.mubr.bf16.vlgmr.msra.gmra.mrb[0].mxu0 %v492_v1  ;;  %3579 = vmatmul.mubr.bf16.vlgmr.msra.gmra.mrb[0].mxu1 %v492_v1 }
 0x226   : > { %3584 = vmatprep.mubr.msk.bf16.mxu0 %vm4403_vm7, %v4401_v28  ;;  %3590 = vmatprep.mubr.msk.bf16.mxu1 %vm4403_vm7, %v4401_v28 }
 0x2f8   : > { %v703_v9 = vpop.f32.mrb[0].mxu0  ;;  %v744_v10 = vpop.f32.mrb[0].mxu1 }
 0x2f9   : > { %v705_v11 = vpop.f32.mrb[1].mxu0  ;;  %v3580_v12 = vpop.f32.mrb[1].mxu1  ;;  %v704_v18 = vadd.f32 %v703_v9, %v529_v8  ;;  %v745_v26 = vadd.f32 %v744_v10, %v537_v23 }
 0x2fa   : > { %v706_v13 = vadd.f32 %v705_v11, %v533_v7  ;;  %v707_v14 = vpop.f32.mrb[2].mxu0  ;;  %v747_v15 = vpop.f32.mrb[2].mxu1 }
 0x2fb   : > { %v708_v16 = vpop.f32.mrb[3].mxu0  ;;  %v3581_v17 = vpop.f32.mrb[3].mxu1  ;;  %v750_v21 = vpack.c.bf16 %v704_v18, %v704_v18  ;;  %v4755_v31 = vpack.c.bf16 %v745_v26, %v745_v26 }
 0x2fc   : > { %v751_v19 = vpack.c.bf16 %v706_v13, %v706_v13 }
 0x2fd   : > { %v1009_v33 = vsel %vm448_vm3, %v4755_v31, 0 }
 0x2fe   : > { %854 = vrot.lane.b32.xlu0 %v751_v19, %s4404_s12  ;;  %804 = vrot.lane.b32.xlu1 %v751_v19, %s4405_s16  ;;  %v758_v20 = vsel %vm753_vm8, %v751_v19, 0 }
 0x2ff   : > { %3583 = vmatpush3.bf16.xpose.msra.mxu0 %v758_v20 }
 0x300   : > { %3594 = vmatprep.subr.bf16.mxu0 %v4401_v28 }
 0x302   : > { %801 = vrot.lane.b32.xlu1 %v750_v21, %s4405_s16 }
 0x306   : > { %852 = vrot.lane.b32.xlu1 %v750_v21, %s4404_s12  ;;  %3585 = vmatmul.mubr.msk.bf16.vlgmr.msra.gmra.mrb[4].mxu0 %vm753_vm8, %v750_v21 }
 0x307   : > { %3596 = vmatprep.mubr.msk.bf16.mxu0 %vm4403_vm7, %v4401_v28 }
 0x30a   : > { %904 = vrot.lane.b32.xlu1 %v751_v19, %s4406_s23 }
 0x30e   : > { %902 = vrot.lane.b32.xlu1 %v750_v21, %s4406_s23 }
 0x370   : > { %v855_v24 = vpop.permute.xlu0 %854  ;;  %v805_v25 = vpop.permute.xlu1 %804 }
 0x371   : > { %v860_v27 = vsel %vm753_vm8, %v855_v24, 0  ;;  %v810_v29 = vsel %vm753_vm8, %v805_v25, 0 }
 0x372   : > { %3589 = vmatpush3.bf16.xpose.msra.mxu1 %v810_v29  ;;  %3595 = vmatpush3.bf16.xpose.msra.mxu0 %v860_v27  ;;  %v3919_v27 = vld [vmem:[#allocation12] sm:$0xff]   ;;  %v3920_v29 = vld [vmem:[#allocation12 + $0x8] sm:$0xff]  }
 0x373   : > { %3606 = vmatprep.subr.bf16.mxu0 %v4401_v28  ;;  %3600 = vmatprep.subr.bf16.mxu1 %v4401_v28 }
 0x374   : > { %v802_v30 = vpop.permute.xlu1 %801 }
 0x378   : > { %v853_v32 = vpop.permute.xlu1 %852 }
 0x379   : > { %3591 = vmatmul.mubr.msk.bf16.vlgmr.msra.gmra.mrb[4].mxu1 %vm753_vm8, %v802_v30  ;;  %3597 = vmatmul.mubr.msk.bf16.vlgmr.msra.gmra.mrb[8].mxu0 %vm753_vm8, %v853_v32 }
 0x37a   : > { %3607 = vmatpush3.bf16.msra.mxu0 %v1009_v33  ;;  %3602 = vmatprep.mubr.msk.bf16.mxu1 %vm4403_vm7, %v4401_v28 }
 0x37b   : > { %3608 = vmatprep.mubr.msk.bf16.mxu0 %vm4403_vm7, %v4401_v28  ;;  %3620 = vmatprep.subr.bf16.mxu0 %v4401_v28 }
 0x37c   : > { %v905_v34 = vpop.permute.xlu1 %904 }
 0x37d   : > { %v910_v35 = vsel %vm753_vm8, %v905_v34, 0 }
 0x37e   : > { %3601 = vmatpush3.bf16.xpose.msra.mxu1 %v910_v35 }
 0x37f   : > { %3612 = vmatprep.subr.bf16.mxu1 %v4401_v28 }
 0x380   : > { %v903_v36 = vpop.permute.xlu1 %902 }
 0x385   : > { %3603 = vmatmul.mubr.msk.bf16.vlgmr.msra.gmra.mrb[8].mxu1 %vm753_vm8, %v903_v36 }
 0x386   : > { %3616 = vmatprep.mubr.msk.bf16.mxu1 %vm4403_vm7, %v4401_v28  ;;  %3613 = vmatpush3.bf16.msra.mxu1 %v3919_v27 }
 0x387   : > { %3614 = vmatprep.subr.bf16.mxu1 %v4401_v28 }
 0x38a   : > { %3615 = vmatpush3.bf16.msra.mxu1 %v3920_v29 }
 0x38b   : > { %3626 = vmatprep.subr.bf16.mxu1 %v4401_v28 }
 0x3d9   : > { %v794_v37 = vpop.f32.mrb[4].mxu0 }
 0x3da   : > { %v952_v38 = vmul.f32 0.17677669, %v794_v37  ;;  %v3586_v39 = vpop.f32.mrb[5].mxu0 }
 0x3db   : > { %v797_v40 = vpop.f32.mrb[6].mxu0 }
 0x3dc   : > { %v3587_v41 = vpop.f32.mrb[7].mxu0  ;;  %v957_v42 = vsel %vm956_vm9, %v952_v38, -inf }
 0x3dd   : > { %958 = vmax.xlane.f32.xlu1 %v957_v42 }
 0x44c   : > { %v846_v43 = vpop.f32.mrb[4].mxu1  ;;  %v896_v44 = vpop.f32.mrb[8].mxu0 }
 0x44d   : > { %v953_v45 = vmul.f32 0.17677669, %v846_v43  ;;  %v954_v46 = vmul.f32 0.17677669, %v896_v44  ;;  %v3592_v47 = vpop.f32.mrb[5].mxu1  ;;  %v3598_v48 = vpop.f32.mrb[9].mxu0 }
 0x44e   : > { %v849_v49 = vpop.f32.mrb[6].mxu1  ;;  %v899_v51 = vpop.f32.mrb[10].mxu0 }
 0x44f   : > { %v3593_v52 = vpop.f32.mrb[7].mxu1  ;;  %v3599_v53 = vpop.f32.mrb[11].mxu0  ;;  %v960_v54 = vsel %vm956_vm9, %v953_v45, -inf  ;;  %v963_v55 = vsel %vm956_vm9, %v954_v46, -inf  ;;  %v3921_v49 = vld [vmem:[#allocation12 + $0x10] sm:$0xff]  }
 0x450   : > { %961 = vmax.xlane.f32.xlu0 %v960_v54  ;;  %964 = vmax.xlane.f32.xlu1 %v963_v55  ;;  %v3922_v55 = vld [vmem:[#allocation12 + $0x18] sm:$0xff]  }
 0x458   : > { %v946_v56 = vpop.f32.mrb[8].mxu1 }
 0x459   : > { %v955_v57 = vmul.f32 0.17677669, %v946_v56  ;;  %v3604_v58 = vpop.f32.mrb[9].mxu1 }
 0x45a   : > { %v949_v59 = vpop.f32.mrb[10].mxu1 }
 0x45b   : > { %v3605_v60 = vpop.f32.mrb[11].mxu1  ;;  %v966_v61 = vsel %vm956_vm9, %v955_v57, -inf }
 0x45c   : > { %967 = vmax.xlane.f32.xlu1 %v966_v61 }
 0x46a   : > { %v959_v62 = vpop.xlane.xlu1 %958 }
 0x46b   : > { %v969_v63 = vsub.f32 %v952_v38, %v959_v62  ;;  %v3924_v62 = vld [vmem:[#allocation12 + $0x28] sm:$0xff]  }
 0x46d   : > { %v973_v1 = vmul.f32 1.442695, %v969_v63 }
 0x46f   : > { %4049 = vpow2.f32 %v973_v1  ;;  %v3925_v1 = vld [vmem:[#allocation12 + $0x30] sm:$0xff]  }
 0x479   : > { %v4050_v2 = vpop.eup %4049 }
 0x47a   : > { %v981_v5 = vsel %vm956_vm9, %v4050_v2, 0.0 }
 0x47b   : > { %982 = vadd.xlane.f32.xlu0 %v981_v5 }
 0x4dd   : > { %v962_v7 = vpop.xlane.xlu0 %961  ;;  %v965_v8 = vpop.xlane.xlu1 %964 }
 0x4de   : > { %v970_v9 = vsub.f32 %v953_v45, %v962_v7  ;;  %v971_v10 = vsub.f32 %v954_v46, %v965_v8 }
 0x4e0   : > { %v975_v11 = vmul.f32 1.442695, %v970_v9  ;;  %v977_v12 = vmul.f32 1.442695, %v971_v10  ;;  %v3926_v9 = vld [vmem:[#allocation12 + $0x38] sm:$0xff]  }
 0x4e2   : > { %4051 = vpow2.f32 %v975_v11 }
 0x4e3   : > { %4053 = vpow2.f32 %v977_v12 }
 0x4e9   : > { %v968_v18 = vpop.xlane.xlu1 %967 }
 0x4ea   : > { %v972_v19 = vsub.f32 %v955_v57, %v968_v18  ;;  %v3923_v57 = vld [vmem:[#allocation12 + $0x20] sm:$0xff]  }
 0x4ec   : > { %v4052_v13 = vpop.eup %4051  ;;  %v979_v20 = vmul.f32 1.442695, %v972_v19  ;;  %v484_v19 = vld [vmem:[#allocation9 + $0x3] ss:$0 sm:$0xff] }
 0x4ed   : > { %v4054_v14 = vpop.eup %4053  ;;  %v984_v15 = vsel %vm956_vm9, %v4052_v13, 0.0 }
 0x4ee   : > { %985 = vadd.xlane.f32.xlu1 %v984_v15  ;;  %v987_v16 = vsel %vm956_vm9, %v4054_v14, 0.0 }
 0x4ef   : > { %988 = vadd.xlane.f32.xlu0 %v987_v16 }
 0x4ff   : > { %1223 = vrot.lane.b32.xlu1 %v4755_v31, %s4404_s12 }
 0x505   : > { %1113 = vrot.lane.b32.xlu0 %v4755_v31, %s4405_s16 }
 0x508   : > { %v983_v17 = vpop.xlane.xlu0 %982 }
 0x509   : > { %4055 = vrcp.f32 %v983_v17 }
 0x50a   : > { %4057 = vpow2.f32 %v979_v20 }
 0x513   : > { %v4056_v21 = vpop.eup %4055 }
 0x514   : > { %v994_v23 = vmul.f32 %v4056_v21, %v4050_v2  ;;  %v4058_v25 = vpop.eup %4057 }
 0x515   : > { %v990_v26 = vsel %vm956_vm9, %v4058_v25, 0.0 }
 0x516   : > { %v1001_v24 = vpack.c.bf16 %v994_v23, %v994_v23 }
 0x518   : > { %3609 = vmatmul.mubr.msk.bf16.vlgmr.msra.gmra.mrb[12].mxu0 %vm956_vm9, %v1001_v24 }
 0x519   : > { %3622 = vmatprep.mubr.msk.bf16.mxu0 %vm4403_vm7, %v4401_v28 }
 0x523   : > { %991 = vadd.xlane.f32.xlu1 %v990_v26 }
 0x534   : > { %1333 = vrot.lane.b32.xlu1 %v4755_v31, %s4406_s23 }
 0x57b   : > { %v986_v30 = vpop.xlane.xlu1 %985 }
 0x57c   : > { %v989_v32 = vpop.xlane.xlu0 %988  ;;  %4059 = vrcp.f32 %v986_v30 }
 0x57d   : > { %4061 = vrcp.f32 %v989_v32 }
 0x57f   : > { %v1224_v36 = vpop.permute.xlu1 %1223 }
 0x580   : > { %v1114_v33 = vpop.permute.xlu0 %1113  ;;  %v1229_v39 = vsel %vm448_vm3, %v1224_v36, 0 }
 0x581   : > { %v1119_v34 = vsel %vm448_vm3, %v1114_v33, 0 }
 0x582   : > { %3621 = vmatpush3.bf16.msra.mxu0 %v1119_v34 }
 0x583   : > { %3634 = vmatprep.subr.bf16.mxu0 %v4401_v28 }
 0x586   : > { %v4060_v35 = vpop.eup %4059 }
 0x587   : > { %v996_v31 = vmul.f32 %v4060_v35, %v4052_v13  ;;  %v4062_v38 = vpop.eup %4061 }
 0x588   : > { %v998_v40 = vmul.f32 %v4062_v38, %v4054_v14 }
 0x589   : > { %v1002_v37 = vpack.c.bf16 %v996_v31, %v996_v31 }
 0x58a   : > { %v1003_v41 = vpack.c.bf16 %v998_v40, %v998_v40  ;;  %v3929_v40 = vld [vmem:[#allocation13 + $0x4] ss:$8 sps:$4 sm:$0xff]  }
 0x58b   : > { %3623 = vmatmul.mubr.msk.bf16.vlgmr.msra.gmra.mrb[16].mxu0 %vm956_vm9, %v1002_v37 }
 0x58c   : > { %3635 = vmatpush3.bf16.msra.mxu0 %v1229_v39  ;;  %3636 = vmatprep.mubr.msk.bf16.mxu0 %vm4403_vm7, %v4401_v28  ;;  %v3927_v39 = vld [vmem:[#allocation13] ss:$8 sps:$4 sm:$0xff]  }
 0x58d   : > { %3648 = vmatprep.subr.bf16.mxu0 %v4401_v28 }
 0x593   : > { %3637 = vmatmul.mubr.msk.bf16.vlgmr.msra.gmra.mrb[20].mxu0 %vm956_vm9, %v1003_v41  ;;  %v3932_v41 = vld [vmem:[#allocation13 + $0x14] ss:$8 sps:$4 sm:$0xff]  }
 0x594   : > { %3650 = vmatprep.mubr.msk.bf16.mxu0 %vm4403_vm7, %v4401_v28 }
 0x5b0   : > { %v992_v42 = vpop.xlane.xlu1 %991 }
 0x5b1   : > { %4063 = vrcp.f32 %v992_v42  ;;  %v3930_v42 = vld [vmem:[#allocation13 + $0x10] ss:$8 sps:$4 sm:$0xff]  }
 0x5b4   : > { %v1334_v43 = vpop.permute.xlu1 %1333 }
 0x5b5   : > { %v1339_v44 = vsel %vm448_vm3, %v1334_v43, 0  ;;  %v3935_v43 = vld [vmem:[#allocation13 + $0x24] ss:$8 sps:$4 sm:$0xff]  }
 0x5b6   : > { %3649 = vmatpush3.bf16.msra.mxu0 %v1339_v44  ;;  %v3933_v44 = vld [vmem:[#allocation13 + $0x20] ss:$8 sps:$4 sm:$0xff]  }
 0x5b7   : > { %1565 = vmatprep.subr.bf16.mxu0 %v3929_v40 }
 0x5bb   : > { %v4064_v45 = vpop.eup %4063 }
 0x5bc   : > { %v1000_v46 = vmul.f32 %v4064_v45, %v4058_v25 }
 0x5be   : > { %v1004_v47 = vpack.c.bf16 %v1000_v46, %v1000_v46 }
 0x5c0   : > { %3651 = vmatmul.mubr.msk.bf16.vlgmr.msra.gmra.mrb[24].mxu0 %vm956_vm9, %v1004_v47 }
 0x5c1   : > { %1597 = vmatprep.mubr.bf16.mxu0 %v4402_v50  ;;  %1566 = vmatpush1.bf16.msra.mxu0 %v3927_v39 }
 0x5c2   : > { %1567 = vmatprep.subr.bf16.mxu0 %v3932_v41 }
 0x5c5   : > { %1568 = vmatpush1.bf16.msra.mxu0 %v3930_v42 }
 0x5c6   : > { %1569 = vmatprep.subr.bf16.mxu0 %v3935_v43 }
 0x5c9   : > { %1570 = vmatpush1.bf16.msra.mxu0 %v3933_v44 }
 0x5eb   : > { %v1045_v48 = vpop.f32.mrb[12].mxu0 }
 0x5ec   : > { %v1051_v51 = vpack.c.bf16 %v1045_v48, %v1045_v48  ;;  %v3610_v52 = vpop.f32.mrb[13].mxu0 }
 0x5ed   : > { %v1048_v53 = vpop.f32.mrb[14].mxu0  ;;  %v3939_v52 = vld [vmem:[#allocation13 + $0x40] ss:$8 sps:$4 sm:$0xff]  }
 0x5ee   : > { %v3611_v54 = vpop.f32.mrb[15].mxu0  ;;  %3617 = vmatmul.mubr.msk.bf16.vlgmr.msra.gmra.mrb[12].mxu1 %vm753_vm8, %v1051_v51  ;;  %v3941_v51 = vld [vmem:[#allocation13 + $0x44] ss:$8 sps:$4 sm:$0xff]   ;;  %v3944_v53 = vld [vmem:[#allocation13 + $0x54] ss:$8 sps:$4 sm:$0xff]  }
 0x5ef   : > { %3627 = vmatpush3.bf16.msra.mxu1 %v3921_v49  ;;  %3630 = vmatprep.mubr.msk.bf16.mxu1 %vm4403_vm7, %v4401_v28  ;;  %v3938_v49 = vld [vmem:[#allocation13 + $0x34] ss:$8 sps:$4 sm:$0xff]   ;;  %v3942_v54 = vld [vmem:[#allocation13 + $0x50] ss:$8 sps:$4 sm:$0xff]  }
 0x5f0   : > { %3628 = vmatprep.subr.bf16.mxu1 %v4401_v28  ;;  %1571 = vmatprep.subr.bf16.mxu0 %v3938_v49 }
 0x5f3   : > { %3629 = vmatpush3.bf16.msra.mxu1 %v3922_v55  ;;  %v3947_v55 = vld [vmem:[#allocation13 + $0x64] ss:$8 sps:$4 sm:$0xff]  }
 0x5f4   : > { %3640 = vmatprep.subr.bf16.mxu1 %v4401_v28 }
 0x65e   : > { %v1155_v56 = vpop.f32.mrb[16].mxu0 }
 0x65f   : > { %v1161_v58 = vpack.c.bf16 %v1155_v56, %v1155_v56  ;;  %v3624_v59 = vpop.f32.mrb[17].mxu0  ;;  %v3945_v56 = vld [vmem:[#allocation13 + $0x60] ss:$8 sps:$4 sm:$0xff]  }
 0x660   : > { %v1158_v60 = vpop.f32.mrb[18].mxu0 }
 0x661   : > { %v3625_v61 = vpop.f32.mrb[19].mxu0  ;;  %3631 = vmatmul.mubr.msk.bf16.vlgmr.msra.gmra.mrb[16].mxu1 %vm753_vm8, %v1161_v58  ;;  %v3948_v58 = vld [vmem:[#allocation13 + $0x70] ss:$8 sps:$4 sm:$0xff]  }
 0x662   : > { %3641 = vmatpush3.bf16.msra.mxu1 %v3923_v57  ;;  %3644 = vmatprep.mubr.msk.bf16.mxu1 %vm4403_vm7, %v4401_v28  ;;  %v3950_v57 = vld [vmem:[#allocation13 + $0x74] ss:$8 sps:$4 sm:$0xff]  }
 0x663   : > { %3642 = vmatprep.subr.bf16.mxu1 %v4401_v28 }
 0x666   : > { %v1265_v63 = vpop.f32.mrb[20].mxu0  ;;  %3643 = vmatpush3.bf16.msra.mxu1 %v3924_v62 }
 0x667   : > { %v1271_v2 = vpack.c.bf16 %v1265_v63, %v1265_v63  ;;  %v3638_v5 = vpop.f32.mrb[21].mxu0  ;;  %3654 = vmatprep.subr.bf16.mxu1 %v4401_v28  ;;  %v488_v63 = vld [vmem:[#allocation9 + $0x6] ss:$0 sm:$0xff] }
 0x668   : > { %v1268_v7 = vpop.f32.mrb[22].mxu0 }
 0x669   : > { %v3639_v8 = vpop.f32.mrb[23].mxu0  ;;  %3645 = vmatmul.mubr.msk.bf16.vlgmr.msra.gmra.mrb[20].mxu1 %vm753_vm8, %v1271_v2  ;;  %v489_v2 = vld [vmem:[#allocation9 + $0x7] ss:$0 sm:$0xff] }
 0x66a   : > { %3655 = vmatpush3.bf16.msra.mxu1 %v3925_v1  ;;  %3658 = vmatprep.mubr.msk.bf16.mxu1 %vm4403_vm7, %v4401_v28 }
 0x66b   : > { %3656 = vmatprep.subr.bf16.mxu1 %v4401_v28 }
 0x66e   : > { %3657 = vmatpush3.bf16.msra.mxu1 %v3926_v9  ;;  %v3951_v9 = vld [vmem:[#allocation15 + $0x40] sm:$0xff]  }
 0x66f   : > { %3481 = vmatprep.subr.bf16.mxu1 %v3951_v9  ;;  %v3974_v9 = vld [vmem:[#allocation10 + $0xe0] ss:$12 sps:$4 sm:$0xff]  }
 0x693   : > { %v1375_v10 = vpop.f32.mrb[24].mxu0 }
 0x694   : > { %v1381_v11 = vpack.c.bf16 %v1375_v10, %v1375_v10  ;;  %v3652_v12 = vpop.f32.mrb[25].mxu0  ;;  %v3952_v10 = vld [vmem:[#allocation15] sm:$0xff]  }
 0x695   : > { %v1378_v13 = vpop.f32.mrb[26].mxu0  ;;  %v3954_v12 = vld [vmem:[#allocation15 + $0x8] sm:$0xff]  }
 0x696   : > { %v3653_v14 = vpop.f32.mrb[27].mxu0  ;;  %3659 = vmatmul.mubr.msk.bf16.vlgmr.msra.gmra.mrb[24].mxu1 %vm753_vm8, %v1381_v11  ;;  %v3953_v11 = vld [vmem:[#allocation15 + $0x48] sm:$0xff]   ;;  %v3955_v13 = vld [vmem:[#allocation15 + $0x50] sm:$0xff]  }
 0x697   : > { %3482 = vmatpush3.bf16.msra.mxu1 %v3952_v10  ;;  %v3956_v14 = vld [vmem:[#allocation15 + $0x10] sm:$0xff]   ;;  %v3971_v10 = vld [vmem:[#allocation10 + $0xd8] ss:$12 sps:$4 sm:$0xff]  }
 0x698   : > { %3483 = vmatprep.subr.bf16.mxu1 %v3953_v11  ;;  %v3977_v11 = vld [vmem:[#allocation10 + $0xf4] ss:$12 sps:$4 sm:$0xff]  }
 0x69b   : > { %3484 = vmatpush3.bf16.msra.mxu1 %v3954_v12  ;;  %v3975_v12 = vld [vmem:[#allocation10 + $0xf0] ss:$12 sps:$4 sm:$0xff]  }
 0x69c   : > { %3485 = vmatprep.subr.bf16.mxu1 %v3955_v13 }
 0x69f   : > { %3486 = vmatpush3.bf16.msra.mxu1 %v3956_v14 }
 0x6c1   : > { %v1105_v15 = vpop.f32.mrb[12].mxu1 }
 0x6c2   : > { %v3618_v16 = vpop.f32.mrb[13].mxu1  ;;  %v1111_v20 = vadd.f32 %v1105_v15, %v484_v19  ;;  %v3957_v15 = vld [vmem:[#allocation15 + $0x58] sm:$0xff]   ;;  %v3961_v19 = vld [vmem:[#allocation15 + $0x68] sm:$0xff]  }
 0x6c3   : > { %v1108_v17 = vpop.f32.mrb[14].mxu1  ;;  %v3958_v16 = vld [vmem:[#allocation15 + $0x18] sm:$0xff]   ;;  %3487 = vmatprep.subr.bf16.mxu1 %v3957_v15 }
 0x6c4   : > { %v3619_v18 = vpop.f32.mrb[15].mxu1  ;;  %v3959_v17 = vld [vmem:[#allocation15 + $0x60] sm:$0xff]   ;;  %3488 = vmatpush3.bf16.msra.mxu1 %v3958_v16 }
 0x6c5   : > { %v3960_v18 = vld [vmem:[#allocation15 + $0x20] sm:$0xff]   ;;  %3489 = vmatprep.subr.bf16.mxu1 %v3959_v17  ;;  %v3981_v17 = vld [vmem:[#allocation10 + $0x10c] ss:$12 sps:$4 sm:$0xff]  }
 0x6c6   : > { %v3978_v16 = vld [vmem:[#allocation10 + $0xf8] ss:$12 sps:$4 sm:$0xff]  }
 0x6c8   : > { %3490 = vmatpush3.bf16.msra.mxu1 %v3960_v18  ;;  %v3979_v18 = vld [vmem:[#allocation10 + $0x108] ss:$12 sps:$4 sm:$0xff]  }
 0x6c9   : > { %3491 = vmatprep.subr.bf16.mxu1 %v3961_v19  ;;  %v3982_v19 = vld [vmem:[#allocation10 + $0x110] ss:$12 sps:$4 sm:$0xff]  }
 0x734   : > { %v1216_v21 = vpop.f32.mrb[16].mxu1 }
 0x735   : > { %v1222_v23 = vadd.f32 %v1216_v21, %v1111_v20  ;;  %v3632_v24 = vpop.f32.mrb[17].mxu1  ;;  %v3962_v20 = vld [vmem:[#allocation15 + $0x28] sm:$0xff]   ;;  %v3963_v21 = vld [vmem:[#allocation15 + $0x70] sm:$0xff]  }
 0x736   : > { %v1219_v25 = vpop.f32.mrb[18].mxu1  ;;  %3492 = vmatpush3.bf16.msra.mxu1 %v3962_v20  ;;  %v3965_v24 = vld [vmem:[#allocation15 + $0x78] sm:$0xff]   ;;  %v3985_v20 = vld [vmem:[#allocation10 + $0x124] ss:$12 sps:$4 sm:$0xff]  }
 0x737   : > { %v3633_v26 = vpop.f32.mrb[19].mxu1  ;;  %3493 = vmatprep.subr.bf16.mxu1 %v3963_v21  ;;  %v3966_v25 = vld [vmem:[#allocation15 + $0x38] sm:$0xff]   ;;  %v3983_v21 = vld [vmem:[#allocation10 + $0x120] ss:$12 sps:$4 sm:$0xff]  }
 0x738   : > { %v486_v26 = vld [vmem:[#allocation9 + $0x4] ss:$8 sm:$0x3] }
 0x73c   : > { %v1326_v27 = vpop.f32.mrb[20].mxu1 }
 0x73d   : > { %v1332_v29 = vadd.f32 %v1326_v27, %v1222_v23  ;;  %v3646_v30 = vpop.f32.mrb[21].mxu1  ;;  %v3964_v23 = vld [vmem:[#allocation15 + $0x30] sm:$0xff]   ;;  %v1478_v27 = vrot.slane %v486_v26, %v4733_v6 }
 0x73e   : > { %v1329_v32 = vpop.f32.mrb[22].mxu1  ;;  %3494 = vmatpush3.bf16.msra.mxu1 %v3964_v23  ;;  %v3986_v23 = vld [vmem:[#allocation10 + $0x128] ss:$12 sps:$4 sm:$0xff]  }
 0x73f   : > { %v3647_v33 = vpop.f32.mrb[23].mxu1  ;;  %3495 = vmatprep.subr.bf16.mxu1 %v3965_v24  ;;  %v3989_v24 = vld [vmem:[#allocation10 + $0x13c] ss:$12 sps:$4 sm:$0xff]  }
 0x742   : > { %3496 = vmatpush3.bf16.msra.mxu1 %v3966_v25  ;;  %v3987_v25 = vld [vmem:[#allocation10 + $0x138] ss:$12 sps:$4 sm:$0xff]  }
 0x743   : > { %3662 = vmatprep.subr.bf16.mxu1 %v4401_v28 }
 0x769   : > { %v1436_v34 = vpop.f32.mrb[24].mxu1 }
 0x76a   : > { %v1442_v35 = vadd.f32 %v1436_v34, %v1332_v29  ;;  %v3660_v31 = vpop.f32.mrb[25].mxu1  ;;  %v1482_v29 = vrot.slane %v486_v26, %v4730_v4  ;;  %v3990_v26 = vld [vmem:[#allocation10 + $0x140] ss:$12 sps:$4 sm:$0xff]  }
 0x76b   : > { %v1439_v36 = vpop.f32.mrb[26].mxu1 }
 0x76c   : > { %v3661_v37 = vpop.f32.mrb[27].mxu1  ;;  %v1443_v38 = vadd.f32 %v1442_v35, %v4719_v0  ;;  %v3936_v0 = vld [vmem:[#allocation13 + $0x30] ss:$8 sps:$4 sm:$0xff]  }
 0x76d   : > { %1572 = vmatpush1.bf16.msra.mxu0 %v3936_v0 }
 0x76e   : > { %1444 = vadd.xlane.f32.xlu0 %v1443_v38  ;;  %1573 = vmatprep.subr.bf16.mxu0 %v3941_v51 }
 0x771   : > { %1574 = vmatpush1.bf16.msra.mxu0 %v3939_v52 }
 0x772   : > { %1575 = vmatprep.subr.bf16.mxu0 %v3944_v53 }
 0x775   : > { %1576 = vmatpush1.bf16.msra.mxu0 %v3942_v54 }
 0x776   : > { %1577 = vmatprep.subr.bf16.mxu0 %v3947_v55 }
 0x779   : > { %1578 = vmatpush1.bf16.msra.mxu0 %v3945_v56 }
 0x77a   : > { %1579 = vmatprep.subr.bf16.mxu0 %v3950_v57  ;;  %v487_v57 = vld [vmem:[#allocation9 + $0x5] ss:$0 sm:$0xff] }
 0x77d   : > { %1580 = vmatpush1.bf16.msra.mxu0 %v3948_v58 }
 0x7fb   : > { %v1445_v45 = vpop.xlane.xlu0 %1444 }
 0x7fc   : > { %v1446_v46 = vmul.f32 0.0078125, %v1445_v45 }
 0x7fe   : > { %v1447_v47 = vsub.f32 %v1443_v38, %v1446_v46 }
 0x800   : > { %v1448_v48 = vmul.f32 %v1447_v47, %v1447_v47 }
 0x802   : > { %1449 = vadd.xlane.f32.xlu1 %v1448_v48 }
 0x88f   : > { %v1450_v59 = vpop.xlane.xlu1 %1449 }
 0x890   : > { %v1451_v60 = vmul.f32 0.0078125, %v1450_v59 }
 0x892   : > { %v1452_v61 = vadd.f32 1e-12, %v1451_v60 }
 0x894   : > { %4065 = vrsqrt.f32 %v1452_v61 }
 0x89e   : > { %v4066_v62 = vpop.eup %4065 }
 0x89f   : > { %v1454_v1 = vmul.f32 %v4066_v62, %v1447_v47 }
 0x8a1   : > { %v1455_v5 = vmul.f32 %v1454_v1, %v488_v63  ;;  %v3967_v1 = vld [vmem:[#allocation10 + $0xc0] ss:$12 sps:$4 sm:$0xff]  }
 0x8a3   : > { %v4819_v7 = vadd.f32 %v1455_v5, %v489_v2  ;;  %v3969_v2 = vld [vmem:[#allocation10 + $0xc4] ss:$12 sps:$4 sm:$0xff]   ;;  %v3970_v5 = vld [vmem:[#allocation10 + $0xc8] ss:$12 sps:$4 sm:$0xff]  }
 0x8a4   : > { %1996 = vmatprep.subr.bf16.mxu0 %v3969_v2 }
 0x8a5   : > { %v1457_v8 = vpack.c.bf16 %v4819_v7, %v4819_v7 }
 0x8a7   : > { %1598 = vmatmul.mubr.bf16.vlgmr.msra.gmra.mrb[28].mxu0 %v1457_v8  ;;  %v3973_v8 = vld [vmem:[#allocation10 + $0xdc] ss:$12 sps:$4 sm:$0xff]  }
 0x8a8   : > { %2028 = vmatprep.mubr.bf16.mxu0 %v4402_v50  ;;  %1997 = vmatpush1.bf16.msra.mxu0 %v3967_v1 }
 0x8a9   : > { %1998 = vmatprep.subr.bf16.mxu0 %v3973_v8 }
 0x8ac   : > { %1999 = vmatpush1.bf16.msra.mxu0 %v3971_v10 }
 0x8ad   : > { %2000 = vmatprep.subr.bf16.mxu0 %v3977_v11 }
 0x8b0   : > { %2001 = vmatpush1.bf16.msra.mxu0 %v3975_v12 }
 0x8b1   : > { %2002 = vmatprep.subr.bf16.mxu0 %v3981_v17 }
 0x8b4   : > { %2003 = vmatpush1.bf16.msra.mxu0 %v3979_v18 }
 0x8b5   : > { %2004 = vmatprep.subr.bf16.mxu0 %v3985_v20 }
 0x8b8   : > { %2005 = vmatpush1.bf16.msra.mxu0 %v3983_v21 }
 0x8b9   : > { %2006 = vmatprep.subr.bf16.mxu0 %v3989_v24 }
 0x8bc   : > { %2007 = vmatpush1.bf16.msra.mxu0 %v3987_v25 }
 0x97a   : > { %v1599_v30 = vpop.f32.mrb[28].mxu0 }
 0x97b   : > { %v1600_v32 = vadd.f32 %v1599_v30, %v1478_v27  ;;  %v1601_v33 = vpop.f32.mrb[29].mxu0  ;;  %v3993_v27 = vld [vmem:[#allocation10 + $0x154] ss:$12 sps:$4 sm:$0xff]   ;;  %v3994_v30 = vld [vmem:[#allocation10 + $0x158] ss:$12 sps:$4 sm:$0xff]  }
 0x97c   : > { %v1602_v34 = vadd.f32 %v1601_v33, %v1482_v29  ;;  %v1603_v35 = vpop.f32.mrb[30].mxu0  ;;  %v3991_v29 = vld [vmem:[#allocation10 + $0x150] ss:$12 sps:$4 sm:$0xff]   ;;  %2008 = vmatprep.subr.bf16.mxu0 %v3993_v27  ;;  %v3995_v33 = vld [vmem:[#allocation10 + $0x168] ss:$12 sps:$4 sm:$0xff]  }
 0x97d   : > { %v1606_v31 = vmul.f32 %v1600_v32, %v1600_v32  ;;  %v1604_v36 = vpop.f32.mrb[31].mxu0  ;;  %2009 = vmatpush1.bf16.msra.mxu0 %v3991_v29 }
 0x97e   : > { %v1607_v37 = vmul.f32 %v1602_v34, %v1602_v34 }
 0x97f   : > { %v1608_v38 = vmul.f32 %v1606_v31, %v1600_v32 }
 0x980   : > { %v1609_v39 = vmul.f32 %v1607_v37, %v1602_v34 }
 0x981   : > { %v1610_v40 = vmul.f32 0.044715, %v1608_v38  ;;  %v490_v38 = vld [vmem:[#allocation9 + $0x18] ss:$0 sm:$0xff] }
 0x982   : > { %v1611_v41 = vmul.f32 0.044715, %v1609_v39 }
 0x983   : > { %v1612_v42 = vadd.f32 %v1610_v40, %v1600_v32  ;;  %v491_v40 = vld [vmem:[#allocation9 + $0x19] ss:$0 sm:$0xff] }
 0x984   : > { %v1613_v43 = vadd.f32 %v1611_v41, %v1602_v34 }
 0x985   : > { %v1614_v44 = vmul.f32 0.7978846, %v1612_v42 }
 0x986   : > { %v1615_v45 = vmul.f32 0.7978846, %v1613_v43 }
 0x987   : > { %4067 = vtanh.f32 %v1614_v44  ;;  %v1809_v44 = vld [vmem:[#allocation9 + $0x1a] ss:$8 sm:$0x7] }
 0x988   : > { %4069 = vtanh.f32 %v1615_v45  ;;  %v1856_v45 = vrot.slane %v1809_v44, %v4733_v6 }
 0x991   : > { %v4068_v46 = vpop.eup %4067 }
 0x992   : > { %v4070_v47 = vpop.eup %4069  ;;  %v1618_v48 = vadd.f32 1.0, %v4068_v46  ;;  %v1860_v46 = vrot.slane %v1809_v44, %v4730_v4 }
 0x993   : > { %v1619_v49 = vadd.f32 1.0, %v4070_v47 }
 0x994   : > { %v1620_v0 = vmul.f32 0.5, %v1618_v48 }
 0x995   : > { %v1621_v51 = vmul.f32 0.5, %v1619_v49 }
 0x996   : > { %v1622_v52 = vmul.f32 %v1620_v0, %v1600_v32  ;;  %v3997_v32 = vld [vmem:[#allocation10 + $0x16c] ss:$12 sps:$4 sm:$0xff]  }
 0x997   : > { %v1623_v53 = vmul.f32 %v1621_v51, %v1602_v34  ;;  %v3998_v34 = vld [vmem:[#allocation10 + $0x170] ss:$12 sps:$4 sm:$0xff]   ;;  %2010 = vmatprep.subr.bf16.mxu0 %v3997_v32 }
 0x998   : > { %v1624_v55 = vpack.c.bf16 %v1622_v52, %v1622_v52  ;;  %2011 = vmatpush1.bf16.msra.mxu0 %v3995_v33 }
 0x999   : > { %v1625_v54 = vpack.c.bf16 %v1623_v53, %v1623_v53  ;;  %3682 = vmatprep.subr.bf16.mxu0 %v4401_v28 }
 0x99b   : > { %1786 = vmatprep.mubr.bf16.mxu1 %v1625_v54 }
 0x99c   : > { %1787 = vmatmul.mubr.bf16.vlgmr.msra.gmra.mrb[28].mxu1 %v1624_v55 }
 0x99d   : > { %3678 = vmatprep.mubr.msk.bf16.mxu1 %vm4403_vm7, %v4401_v28  ;;  %3663 = vmatpush3.bf16.msra.mxu1 %v3970_v5 }
 0x99e   : > { %3664 = vmatprep.subr.bf16.mxu1 %v4401_v28 }
 0x9a1   : > { %3665 = vmatpush3.bf16.msra.mxu1 %v3974_v9 }
 0x9a2   : > { %3666 = vmatprep.subr.bf16.mxu1 %v4401_v28 }
 0x9a5   : > { %3667 = vmatpush3.bf16.msra.mxu1 %v3978_v16 }
 0x9a6   : > { %3668 = vmatprep.subr.bf16.mxu1 %v4401_v28 }
 0x9a9   : > { %3669 = vmatpush3.bf16.msra.mxu1 %v3982_v19 }
 0x9aa   : > { %3670 = vmatprep.subr.bf16.mxu1 %v4401_v28 }
 0x9ad   : > { %3671 = vmatpush3.bf16.msra.mxu1 %v3986_v23 }
 0x9ae   : > { %3672 = vmatprep.subr.bf16.mxu1 %v4401_v28 }
 0x9b1   : > { %3673 = vmatpush3.bf16.msra.mxu1 %v3990_v26 }
 0x9b2   : > { %3674 = vmatprep.subr.bf16.mxu1 %v4401_v28 }
 0x9b5   : > { %3675 = vmatpush3.bf16.msra.mxu1 %v3994_v30 }
 0x9b6   : > { %3676 = vmatprep.subr.bf16.mxu1 %v4401_v28 }
 0x9b9   : > { %3677 = vmatpush3.bf16.msra.mxu1 %v3998_v34 }
 0x9ba   : > { %3688 = vmatprep.subr.bf16.mxu1 %v4401_v28 }
 0xa6f   : > { %v3497_v56 = vpop.f32.mrb[28].mxu1 }
 0xa70   : > { %v3498_v58 = vpop.f32.mrb[29].mxu1 }
 0xa71   : > { %v3499_v59 = vadd.f32 %v3498_v58, %v3497_v56  ;;  %v3500_v60 = vpop.f32.mrb[30].mxu1 }
 0xa72   : > { %v3501_v61 = vpop.f32.mrb[31].mxu1 }
 0xa73   : > { %v1789_v62 = vadd.f32 %v3499_v59, %v487_v57 }
 0xa75   : > { %v1794_v63 = vadd.f32 %v1789_v62, %v4819_v7  ;;  %v1864_v62 = vrot.slane %v1809_v44, %v536_v22 }
 0xa77   : > { %1795 = vadd.xlane.f32.xlu0 %v1794_v63 }
 0xb04   : > { %v1796_v7 = vpop.xlane.xlu0 %1795 }
 0xb05   : > { %v1797_v13 = vmul.f32 0.0078125, %v1796_v7 }
 0xb07   : > { %v1798_v14 = vsub.f32 %v1794_v63, %v1797_v13 }
 0xb09   : > { %v1799_v15 = vmul.f32 %v1798_v14, %v1798_v14 }
 0xb0b   : > { %1800 = vadd.xlane.f32.xlu0 %v1799_v15 }
 0xb98   : > { %v1801_v35 = vpop.xlane.xlu0 %1800 }
 0xb99   : > { %v1802_v31 = vmul.f32 0.0078125, %v1801_v35 }
 0xb9b   : > { %v1803_v36 = vadd.f32 1e-12, %v1802_v31 }
 0xb9d   : > { %4071 = vrsqrt.f32 %v1803_v36 }
 0xba7   : > { %v4072_v37 = vpop.eup %4071 }
 0xba8   : > { %v1805_v39 = vmul.f32 %v4072_v37, %v1798_v14 }
 0xbaa   : > { %v1806_v41 = vmul.f32 %v1805_v39, %v490_v38 }
 0xbac   : > { %v4839_v42 = vadd.f32 %v1806_v41, %v491_v40 }
 0xbae   : > { %v1818_v43 = vpack.c.bf16 %v4839_v42, %v4839_v42 }
 0xbb0   : > { %2029 = vmatmul.mubr.bf16.vlgmr.msra.gmra.mrb[32].mxu0 %v1818_v43  ;;  %3679 = vmatmul.mubr.bf16.vlgmr.msra.gmra.mrb[32].mxu1 %v1818_v43 }
 0xbb1   : > { %3684 = vmatprep.mubr.msk.bf16.mxu0 %vm4403_vm7, %v4401_v28  ;;  %3690 = vmatprep.mubr.msk.bf16.mxu1 %vm4403_vm7, %v4401_v28 }
 0xc83   : > { %v2030_v47 = vpop.f32.mrb[32].mxu0  ;;  %v2071_v48 = vpop.f32.mrb[32].mxu1 }
 0xc84   : > { %v2031_v49 = vadd.f32 %v2030_v47, %v1856_v45  ;;  %v2032_v0 = vpop.f32.mrb[33].mxu0  ;;  %v3680_v51 = vpop.f32.mrb[33].mxu1  ;;  %v2072_v2 = vadd.f32 %v2071_v48, %v1864_v62 }
 0xc85   : > { %v2033_v52 = vadd.f32 %v2032_v0, %v1860_v46  ;;  %v2034_v53 = vpop.f32.mrb[34].mxu0  ;;  %v2074_v54 = vpop.f32.mrb[34].mxu1 }
 0xc86   : > { %v2077_v55 = vpack.c.bf16 %v2031_v49, %v2031_v49  ;;  %v2035_v56 = vpop.f32.mrb[35].mxu0  ;;  %v3681_v57 = vpop.f32.mrb[35].mxu1  ;;  %v4866_v9 = vpack.c.bf16 %v2072_v2, %v2072_v2  ;;  %v4000_v2 = vld [vmem:[#allocation12 + $0x48] sm:$0xff]  }
 0xc87   : > { %v2078_v58 = vpack.c.bf16 %v2033_v52, %v2033_v52 }
 0xc88   : > { %2127 = vrot.lane.b32.xlu0 %v2077_v55, %s4405_s16  ;;  %v2334_v22 = vsel %vm448_vm3, %v4866_v9, 0 }
 0xc89   : > { %2130 = vrot.lane.b32.xlu1 %v2078_v58, %s4405_s16  ;;  %v2084_v59 = vsel %vm753_vm8, %v2078_v58, 0 }
 0xc8a   : > { %3683 = vmatpush3.bf16.xpose.msra.mxu0 %v2084_v59 }
 0xc8b   : > { %3694 = vmatprep.subr.bf16.mxu0 %v4401_v28 }
 0xc8c   : > { %2230 = vrot.lane.b32.xlu0 %v2078_v58, %s4406_s23 }
 0xc8d   : > { %2180 = vrot.lane.b32.xlu1 %v2078_v58, %s4404_s12 }
 0xc91   : > { %2178 = vrot.lane.b32.xlu1 %v2077_v55, %s4404_s12  ;;  %3685 = vmatmul.mubr.msk.bf16.vlgmr.msra.gmra.mrb[36].mxu0 %vm753_vm8, %v2077_v55 }
 0xc92   : > { %3696 = vmatprep.mubr.msk.bf16.mxu0 %vm4403_vm7, %v4401_v28 }
 0xc95   : > { %2228 = vrot.lane.b32.xlu1 %v2077_v55, %s4406_s23 }
 0xcfa   : > { %v2128_v60 = vpop.permute.xlu0 %2127 }
 0xcfb   : > { %v2131_v61 = vpop.permute.xlu1 %2130 }
 0xcfc   : > { %v2136_v63 = vsel %vm753_vm8, %v2131_v61, 0 }
 0xcfd   : > { %3689 = vmatpush3.bf16.xpose.msra.mxu1 %v2136_v63 }
 0xcfe   : > { %3700 = vmatprep.subr.bf16.mxu1 %v4401_v28  ;;  %v2231_v8 = vpop.permute.xlu0 %2230 }
 0xcff   : > { %v2181_v1 = vpop.permute.xlu1 %2180  ;;  %v2236_v10 = vsel %vm753_vm8, %v2231_v8, 0 }
 0xd00   : > { %v2186_v5 = vsel %vm753_vm8, %v2181_v1, 0  ;;  %v3999_v1 = vld [vmem:[#allocation12 + $0x40] sm:$0xff]  }
 0xd01   : > { %3695 = vmatpush3.bf16.xpose.msra.mxu0 %v2186_v5 }
 0xd02   : > { %3706 = vmatprep.subr.bf16.mxu0 %v4401_v28 }
 0xd03   : > { %v2179_v3 = vpop.permute.xlu1 %2178 }
 0xd04   : > { %3691 = vmatmul.mubr.msk.bf16.vlgmr.msra.gmra.mrb[36].mxu1 %vm753_vm8, %v2128_v60 }
 0xd05   : > { %3701 = vmatpush3.bf16.xpose.msra.mxu1 %v2236_v10  ;;  %3702 = vmatprep.mubr.msk.bf16.mxu1 %vm4403_vm7, %v4401_v28 }
 0xd06   : > { %3712 = vmatprep.subr.bf16.mxu1 %v4401_v28 }
 0xd07   : > { %v2229_v11 = vpop.permute.xlu1 %2228 }
 0xd08   : > { %3697 = vmatmul.mubr.msk.bf16.vlgmr.msra.gmra.mrb[40].mxu0 %vm753_vm8, %v2179_v3 }
 0xd09   : > { %3707 = vmatpush3.bf16.msra.mxu0 %v2334_v22  ;;  %3708 = vmatprep.mubr.msk.bf16.mxu0 %vm4403_vm7, %v4401_v28 }
 0xd0a   : > { %3720 = vmatprep.subr.bf16.mxu0 %v4401_v28 }
 0xd0c   : > { %3703 = vmatmul.mubr.msk.bf16.vlgmr.msra.gmra.mrb[40].mxu1 %vm753_vm8, %v2229_v11 }
 0xd0d   : > { %3716 = vmatprep.mubr.msk.bf16.mxu1 %vm4403_vm7, %v4401_v28  ;;  %3713 = vmatpush3.bf16.msra.mxu1 %v3999_v1 }
 0xd0e   : > { %3714 = vmatprep.subr.bf16.mxu1 %v4401_v28 }
 0xd11   : > { %3715 = vmatpush3.bf16.msra.mxu1 %v4000_v2 }
 0xd12   : > { %3726 = vmatprep.subr.bf16.mxu1 %v4401_v28 }
 0xd64   : > { %v2120_v12 = vpop.f32.mrb[36].mxu0 }
 0xd65   : > { %v2278_v7 = vmul.f32 0.17677669, %v2120_v12  ;;  %v3686_v13 = vpop.f32.mrb[37].mxu0 }
 0xd66   : > { %v2123_v14 = vpop.f32.mrb[38].mxu0 }
 0xd67   : > { %v3687_v15 = vpop.f32.mrb[39].mxu0  ;;  %v2282_v16 = vsel %vm956_vm9, %v2278_v7, -inf }
 0xd68   : > { %2283 = vmax.xlane.f32.xlu0 %v2282_v16 }
 0xdd7   : > { %v2172_v17 = vpop.f32.mrb[36].mxu1 }
 0xdd8   : > { %v2279_v18 = vmul.f32 0.17677669, %v2172_v17  ;;  %v3692_v19 = vpop.f32.mrb[37].mxu1 }
 0xdd9   : > { %v2175_v20 = vpop.f32.mrb[38].mxu1 }
 0xdda   : > { %v3693_v21 = vpop.f32.mrb[39].mxu1  ;;  %v2285_v23 = vsel %vm956_vm9, %v2279_v18, -inf }
 0xddb   : > { %2286 = vmax.xlane.f32.xlu1 %v2285_v23  ;;  %v2222_v24 = vpop.f32.mrb[40].mxu0  ;;  %v4001_v21 = vld [vmem:[#allocation12 + $0x50] sm:$0xff]  }
 0xddc   : > { %v2280_v25 = vmul.f32 0.17677669, %v2222_v24  ;;  %v3698_v26 = vpop.f32.mrb[41].mxu0 }
 0xddd   : > { %v2225_v27 = vpop.f32.mrb[42].mxu0 }
 0xdde   : > { %v3699_v29 = vpop.f32.mrb[43].mxu0  ;;  %v2288_v30 = vsel %vm956_vm9, %v2280_v25, -inf  ;;  %v4002_v27 = vld [vmem:[#allocation12 + $0x58] sm:$0xff]  }
 0xddf   : > { %v2272_v32 = vpop.f32.mrb[40].mxu1  ;;  %2289 = vmax.xlane.f32.xlu0 %v2288_v30 }
 0xde0   : > { %v2281_v33 = vmul.f32 0.17677669, %v2272_v32  ;;  %v3704_v34 = vpop.f32.mrb[41].mxu1 }
 0xde1   : > { %v2275_v35 = vpop.f32.mrb[42].mxu1 }
 0xde2   : > { %v3705_v31 = vpop.f32.mrb[43].mxu1  ;;  %v2291_v36 = vsel %vm956_vm9, %v2281_v33, -inf  ;;  %v4004_v35 = vld [vmem:[#allocation12 + $0x68] sm:$0xff]  }
 0xde3   : > { %2292 = vmax.xlane.f32.xlu0 %v2291_v36  ;;  %v4005_v36 = vld [vmem:[#allocation12 + $0x70] sm:$0xff]  }
 0xdf5   : > { %v2284_v37 = vpop.xlane.xlu0 %2283 }
 0xdf6   : > { %v2294_v38 = vsub.f32 %v2278_v7, %v2284_v37 }
 0xdf8   : > { %v2298_v39 = vmul.f32 1.442695, %v2294_v38 }
 0xdfa   : > { %4073 = vpow2.f32 %v2298_v39 }
 0xe04   : > { %v4074_v40 = vpop.eup %4073 }
 0xe05   : > { %v2306_v41 = vsel %vm956_vm9, %v4074_v40, 0.0 }
 0xe06   : > { %2307 = vadd.xlane.f32.xlu1 %v2306_v41  ;;  %v4006_v41 = vld [vmem:[#allocation12 + $0x78] sm:$0xff]  }
 0xe17   : > { %2439 = vrot.lane.b32.xlu1 %v4866_v9, %s4405_s16 }
 0xe68   : > { %v2287_v43 = vpop.xlane.xlu1 %2286 }
 0xe69   : > { %v2295_v44 = vsub.f32 %v2279_v18, %v2287_v43 }
 0xe6b   : > { %v2300_v45 = vmul.f32 1.442695, %v2295_v44 }
 0xe6c   : > { %v2290_v46 = vpop.xlane.xlu0 %2289 }
 0xe6d   : > { %4075 = vpow2.f32 %v2300_v45  ;;  %v2296_v47 = vsub.f32 %v2280_v25, %v2290_v46 }
 0xe6f   : > { %v2302_v48 = vmul.f32 1.442695, %v2296_v47 }
 0xe70   : > { %v2293_v49 = vpop.xlane.xlu0 %2292 }
 0xe71   : > { %4077 = vpow2.f32 %v2302_v48  ;;  %v2297_v0 = vsub.f32 %v2281_v33, %v2293_v49 }
 0xe73   : > { %v2304_v51 = vmul.f32 1.442695, %v2297_v0 }
 0xe75   : > { %4079 = vpow2.f32 %v2304_v51 }
 0xe77   : > { %v4076_v52 = vpop.eup %4075 }
 0xe78   : > { %v2309_v53 = vsel %vm956_vm9, %v4076_v52, 0.0 }
 0xe79   : > { %2310 = vadd.xlane.f32.xlu0 %v2309_v53 }
 0xe7b   : > { %v4078_v54 = vpop.eup %4077 }
 0xe7c   : > { %v2312_v55 = vsel %vm956_vm9, %v4078_v54, 0.0 }
 0xe7d   : > { %2313 = vadd.xlane.f32.xlu1 %v2312_v55 }
 0xe7f   : > { %v4080_v56 = vpop.eup %4079 }
 0xe80   : > { %v2315_v57 = vsel %vm956_vm9, %v4080_v56, 0.0 }
 0xe81   : > { %2316 = vadd.xlane.f32.xlu0 %v2315_v57 }
 0xe8e   : > { %2659 = vrot.lane.b32.xlu1 %v4866_v9, %s4406_s23 }
 0xe93   : > { %v2308_v58 = vpop.xlane.xlu1 %2307 }
 0xe94   : > { %4081 = vrcp.f32 %v2308_v58 }
 0xe97   : > { %2549 = vrot.lane.b32.xlu0 %v4866_v9, %s4404_s12  ;;  %v2440_v61 = vpop.permute.xlu1 %2439 }
 0xe98   : > { %v2445_v63 = vsel %vm448_vm3, %v2440_v61, 0 }
 0xe9e   : > { %v4082_v59 = vpop.eup %4081 }
 0xe9f   : > { %v2319_v60 = vmul.f32 %v4082_v59, %v4074_v40 }
 0xea1   : > { %v2326_v62 = vpack.c.bf16 %v2319_v60, %v2319_v60 }
 0xea3   : > { %3709 = vmatmul.mubr.msk.bf16.vlgmr.msra.gmra.mrb[44].mxu0 %vm956_vm9, %v2326_v62 }
 0xea4   : > { %3721 = vmatpush3.bf16.msra.mxu0 %v2445_v63  ;;  %3722 = vmatprep.mubr.msk.bf16.mxu0 %vm4403_vm7, %v4401_v28 }
 0xea5   : > { %3734 = vmatprep.subr.bf16.mxu0 %v4401_v28 }
 0xf06   : > { %v2311_v5 = vpop.xlane.xlu0 %2310 }
 0xf07   : > { %4083 = vrcp.f32 %v2311_v5 }
 0xf0a   : > { %v2314_v8 = vpop.xlane.xlu1 %2313 }
 0xf0b   : > { %4085 = vrcp.f32 %v2314_v8 }
 0xf0e   : > { %v2317_v9 = vpop.xlane.xlu0 %2316  ;;  %v2660_v14 = vpop.permute.xlu1 %2659 }
 0xf0f   : > { %4087 = vrcp.f32 %v2317_v9  ;;  %v2665_v17 = vsel %vm448_vm3, %v2660_v14, 0 }
 0xf11   : > { %v4084_v10 = vpop.eup %4083 }
 0xf12   : > { %v2321_v3 = vmul.f32 %v4084_v10, %v4076_v52  ;;  %v2550_v22 = vpop.permute.xlu0 %2549  ;;  %v1810_v52 = vld [vmem:[#allocation9 + $0x1b] ss:$0 sm:$0xff]  ;;  %v4007_v10 = vld [vmem:[#allocation13 + $0x80] ss:$8 sps:$4 sm:$0xff]  }
 0xf13   : > { %v2555_v7 = vsel %vm448_vm3, %v2550_v22, 0  ;;  %v4012_v22 = vld [vmem:[#allocation13 + $0x94] ss:$8 sps:$4 sm:$0xff]  }
 0xf14   : > { %v2327_v11 = vpack.c.bf16 %v2321_v3, %v2321_v3  ;;  %v4009_v3 = vld [vmem:[#allocation13 + $0x84] ss:$8 sps:$4 sm:$0xff]  }
 0xf15   : > { %v4086_v12 = vpop.eup %4085 }
 0xf16   : > { %3723 = vmatmul.mubr.msk.bf16.vlgmr.msra.gmra.mrb[48].mxu0 %vm956_vm9, %v2327_v11  ;;  %v2323_v13 = vmul.f32 %v4086_v12, %v4078_v54  ;;  %v4010_v11 = vld [vmem:[#allocation13 + $0x90] ss:$8 sps:$4 sm:$0xff]   ;;  %v4015_v12 = vld [vmem:[#allocation13 + $0xa4] ss:$8 sps:$4 sm:$0xff]  }
 0xf17   : > { %3735 = vmatpush3.bf16.msra.mxu0 %v2555_v7  ;;  %3736 = vmatprep.mubr.msk.bf16.mxu0 %vm4403_vm7, %v4401_v28  ;;  %v4013_v7 = vld [vmem:[#allocation13 + $0xa0] ss:$8 sps:$4 sm:$0xff]  }
 0xf18   : > { %3748 = vmatprep.subr.bf16.mxu0 %v4401_v28  ;;  %v2328_v15 = vpack.c.bf16 %v2323_v13, %v2323_v13 }
 0xf19   : > { %v4088_v16 = vpop.eup %4087 }
 0xf1a   : > { %v2325_v18 = vmul.f32 %v4088_v16, %v4080_v56 }
 0xf1c   : > { %v2329_v19 = vpack.c.bf16 %v2325_v18, %v2325_v18  ;;  %v4021_v18 = vld [vmem:[#allocation13 + $0xc4] ss:$8 sps:$4 sm:$0xff]  }
 0xf1e   : > { %3737 = vmatmul.mubr.msk.bf16.vlgmr.msra.gmra.mrb[52].mxu0 %vm956_vm9, %v2328_v15 }
 0xf1f   : > { %3749 = vmatpush3.bf16.msra.mxu0 %v2665_v17  ;;  %3750 = vmatprep.mubr.msk.bf16.mxu0 %vm4403_vm7, %v4401_v28  ;;  %v4018_v17 = vld [vmem:[#allocation13 + $0xb4] ss:$8 sps:$4 sm:$0xff]  }
 0xf20   : > { %2892 = vmatprep.subr.bf16.mxu0 %v4009_v3 }
 0xf26   : > { %3751 = vmatmul.mubr.msk.bf16.vlgmr.msra.gmra.mrb[56].mxu0 %vm956_vm9, %v2329_v19  ;;  %v4019_v19 = vld [vmem:[#allocation13 + $0xc0] ss:$8 sps:$4 sm:$0xff]  }
 0xf27   : > { %2924 = vmatprep.mubr.bf16.mxu0 %v4402_v50  ;;  %v4003_v50 = vld [vmem:[#allocation12 + $0x60] sm:$0xff]   ;;  %2893 = vmatpush1.bf16.msra.mxu0 %v4007_v10 }
 0xf28   : > { %2894 = vmatprep.subr.bf16.mxu0 %v4012_v22 }
 0xf2b   : > { %2895 = vmatpush1.bf16.msra.mxu0 %v4010_v11 }
 0xf2c   : > { %2896 = vmatprep.subr.bf16.mxu0 %v4015_v12 }
 0xf2f   : > { %2897 = vmatpush1.bf16.msra.mxu0 %v4013_v7 }
 0xf30   : > { %2898 = vmatprep.subr.bf16.mxu0 %v4018_v17 }
 0xf76   : > { %v2370_v20 = vpop.f32.mrb[44].mxu0 }
 0xf77   : > { %v2376_v23 = vpack.c.bf16 %v2370_v20, %v2370_v20  ;;  %v3710_v24 = vpop.f32.mrb[45].mxu0  ;;  %v4024_v20 = vld [vmem:[#allocation13 + $0xd4] ss:$8 sps:$4 sm:$0xff]  }
 0xf78   : > { %v2373_v25 = vpop.f32.mrb[46].mxu0  ;;  %v4025_v24 = vld [vmem:[#allocation13 + $0xe0] ss:$8 sps:$4 sm:$0xff]  }
 0xf79   : > { %v3711_v26 = vpop.f32.mrb[47].mxu0  ;;  %3717 = vmatmul.mubr.msk.bf16.vlgmr.msra.gmra.mrb[44].mxu1 %vm753_vm8, %v2376_v23  ;;  %v4027_v23 = vld [vmem:[#allocation13 + $0xe4] ss:$8 sps:$4 sm:$0xff]   ;;  %v4030_v25 = vld [vmem:[#allocation13 + $0xf4] ss:$8 sps:$4 sm:$0xff]  }
 0xf7a   : > { %3727 = vmatpush3.bf16.msra.mxu1 %v4001_v21  ;;  %3730 = vmatprep.mubr.msk.bf16.mxu1 %vm4403_vm7, %v4401_v28  ;;  %v4022_v21 = vld [vmem:[#allocation13 + $0xd0] ss:$8 sps:$4 sm:$0xff]  }
 0xf7b   : > { %3728 = vmatprep.subr.bf16.mxu1 %v4401_v28  ;;  %v4028_v26 = vld [vmem:[#allocation13 + $0xf0] ss:$8 sps:$4 sm:$0xff]  }
 0xf7e   : > { %3729 = vmatpush3.bf16.msra.mxu1 %v4002_v27 }
 0xf7f   : > { %3740 = vmatprep.subr.bf16.mxu1 %v4401_v28 }
 0xfe9   : > { %v2481_v29 = vpop.f32.mrb[48].mxu0 }
 0xfea   : > { %v2487_v30 = vpack.c.bf16 %v2481_v29, %v2481_v29  ;;  %v3724_v32 = vpop.f32.mrb[49].mxu0 }
 0xfeb   : > { %v2484_v33 = vpop.f32.mrb[50].mxu0  ;;  %v1814_v32 = vld [vmem:[#allocation9 + $0x1e] ss:$0 sm:$0xff] }
 0xfec   : > { %v3725_v34 = vpop.f32.mrb[51].mxu0  ;;  %3731 = vmatmul.mubr.msk.bf16.vlgmr.msra.gmra.mrb[48].mxu1 %vm753_vm8, %v2487_v30 }
 0xfed   : > { %3741 = vmatpush3.bf16.msra.mxu1 %v4003_v50  ;;  %3744 = vmatprep.mubr.msk.bf16.mxu1 %vm4403_vm7, %v4401_v28  ;;  %v1815_v34 = vld [vmem:[#allocation9 + $0x1f] ss:$0 sm:$0xff] }
 0xfee   : > { %3742 = vmatprep.subr.bf16.mxu1 %v4401_v28 }
 0xff1   : > { %v2591_v31 = vpop.f32.mrb[52].mxu0  ;;  %3743 = vmatpush3.bf16.msra.mxu1 %v4004_v35 }
 0xff2   : > { %v2597_v37 = vpack.c.bf16 %v2591_v31, %v2591_v31  ;;  %v3738_v38 = vpop.f32.mrb[53].mxu0  ;;  %3754 = vmatprep.subr.bf16.mxu1 %v4401_v28 }
 0xff3   : > { %v2594_v39 = vpop.f32.mrb[54].mxu0  ;;  %v4032_v38 = vld [vmem:[#allocation15 + $0x80] sm:$0xff]  }
 0xff4   : > { %v3739_v40 = vpop.f32.mrb[55].mxu0  ;;  %3745 = vmatmul.mubr.msk.bf16.vlgmr.msra.gmra.mrb[52].mxu1 %vm753_vm8, %v2597_v37  ;;  %v4031_v37 = vld [vmem:[#allocation15 + $0xc0] sm:$0xff]   ;;  %v4033_v39 = vld [vmem:[#allocation15 + $0xc8] sm:$0xff]  }
 0xff5   : > { %3755 = vmatpush3.bf16.msra.mxu1 %v4005_v36  ;;  %3758 = vmatprep.mubr.msk.bf16.mxu1 %vm4403_vm7, %v4401_v28  ;;  %v4034_v40 = vld [vmem:[#allocation15 + $0x88] sm:$0xff]  }
 0xff6   : > { %3756 = vmatprep.subr.bf16.mxu1 %v4401_v28 }
 0xff9   : > { %v2701_v43 = vpop.f32.mrb[56].mxu0  ;;  %3757 = vmatpush3.bf16.msra.mxu1 %v4006_v41  ;;  %v4035_v41 = vld [vmem:[#allocation15 + $0xd0] sm:$0xff]  }
 0xffa   : > { %v2707_v44 = vpack.c.bf16 %v2701_v43, %v2701_v43  ;;  %v3752_v45 = vpop.f32.mrb[57].mxu0  ;;  %3540 = vmatprep.subr.bf16.mxu1 %v4031_v37  ;;  %v4036_v43 = vld [vmem:[#allocation15 + $0x90] sm:$0xff]   ;;  %v1817_v37 = vld [vmem:[#allocation9 + $0x31] ss:$0 sm:$0xff] }
 0xffb   : > { %v2704_v46 = vpop.f32.mrb[58].mxu0  ;;  %v4038_v45 = vld [vmem:[#allocation15 + $0x98] sm:$0xff]  }
 0xffc   : > { %v3753_v47 = vpop.f32.mrb[59].mxu0  ;;  %3759 = vmatmul.mubr.msk.bf16.vlgmr.msra.gmra.mrb[56].mxu1 %vm753_vm8, %v2707_v44  ;;  %v4037_v44 = vld [vmem:[#allocation15 + $0xd8] sm:$0xff]   ;;  %v4039_v46 = vld [vmem:[#allocation15 + $0xe0] sm:$0xff]  }
 0xffd   : > { %3541 = vmatpush3.bf16.msra.mxu1 %v4032_v38  ;;  %v4040_v47 = vld [vmem:[#allocation15 + $0xa0] sm:$0xff]  }
 0xffe   : > { %3542 = vmatprep.subr.bf16.mxu1 %v4033_v39 }
0x1001   : > { %3543 = vmatpush3.bf16.msra.mxu1 %v4034_v40 }
0x1002   : > { %3544 = vmatprep.subr.bf16.mxu1 %v4035_v41 }
0x1005   : > { %3545 = vmatpush3.bf16.msra.mxu1 %v4036_v43 }
0x1006   : > { %3546 = vmatprep.subr.bf16.mxu1 %v4037_v44 }
0x1009   : > { %3547 = vmatpush3.bf16.msra.mxu1 %v4038_v45 }
0x100a   : > { %3548 = vmatprep.subr.bf16.mxu1 %v4039_v46 }
0x100d   : > { %3549 = vmatpush3.bf16.msra.mxu1 %v4040_v47 }
0x104c   : > { %v2431_v48 = vpop.f32.mrb[44].mxu1 }
0x104d   : > { %v3718_v49 = vpop.f32.mrb[45].mxu1  ;;  %v2437_v53 = vadd.f32 %v2431_v48, %v1810_v52  ;;  %v4041_v48 = vld [vmem:[#allocation15 + $0xe8] sm:$0xff]   ;;  %v4045_v52 = vld [vmem:[#allocation15 + $0xf8] sm:$0xff]  }
0x104e   : > { %v2434_v0 = vpop.f32.mrb[46].mxu1  ;;  %v4042_v49 = vld [vmem:[#allocation15 + $0xa8] sm:$0xff]   ;;  %3550 = vmatprep.subr.bf16.mxu1 %v4041_v48 }
0x104f   : > { %v3719_v51 = vpop.f32.mrb[47].mxu1  ;;  %v4043_v0 = vld [vmem:[#allocation15 + $0xf0] sm:$0xff]   ;;  %3551 = vmatpush3.bf16.msra.mxu1 %v4042_v49 }
0x1050   : > { %v4044_v51 = vld [vmem:[#allocation15 + $0xb0] sm:$0xff]   ;;  %3552 = vmatprep.subr.bf16.mxu1 %v4043_v0 }
0x1053   : > { %3553 = vmatpush3.bf16.msra.mxu1 %v4044_v51 }
0x1054   : > { %3554 = vmatprep.subr.bf16.mxu1 %v4045_v52 }
0x10bf   : > { %v2542_v54 = vpop.f32.mrb[48].mxu1 }
0x10c0   : > { %v2548_v55 = vadd.f32 %v2542_v54, %v2437_v53  ;;  %v3732_v56 = vpop.f32.mrb[49].mxu1  ;;  %v4046_v53 = vld [vmem:[#allocation15 + $0xb8] sm:$0xff]  }
0x10c1   : > { %v2545_v57 = vpop.f32.mrb[50].mxu1  ;;  %3555 = vmatpush3.bf16.msra.mxu1 %v4046_v53  ;;  %v1812_v54 = vld [vmem:[#allocation9 + $0x1c] ss:$8 sm:$0x3] }
0x10c2   : > { %v3733_v58 = vpop.f32.mrb[51].mxu1  ;;  %v2809_v56 = vrot.slane %v1812_v54, %v4730_v4 }
0x10c7   : > { %v2652_v28 = vpop.f32.mrb[52].mxu1 }
0x10c8   : > { %v2658_v59 = vadd.f32 %v2652_v28, %v2548_v55  ;;  %v3746_v60 = vpop.f32.mrb[53].mxu1  ;;  %v2805_v55 = vrot.slane %v1812_v54, %v4733_v6 }
0x10c9   : > { %v2655_v61 = vpop.f32.mrb[54].mxu1 }
0x10ca   : > { %v3747_v62 = vpop.f32.mrb[55].mxu1 }
0x10cf   : > { %v2762_v63 = vpop.f32.mrb[56].mxu1 }
0x10d0   : > { %v2768_v1 = vadd.f32 %v2762_v63, %v2658_v59  ;;  %v3760_v2 = vpop.f32.mrb[57].mxu1 }
0x10d1   : > { %v2765_v5 = vpop.f32.mrb[58].mxu1 }
0x10d2   : > { %v3761_v8 = vpop.f32.mrb[59].mxu1  ;;  %v2769_v9 = vadd.f32 %v2768_v1, %v4839_v42  ;;  %v4016_v42 = vld [vmem:[#allocation13 + $0xb0] ss:$8 sps:$4 sm:$0xff]  }
0x10d3   : > { %2899 = vmatpush1.bf16.msra.mxu0 %v4016_v42 }
0x10d4   : > { %2770 = vadd.xlane.f32.xlu1 %v2769_v9  ;;  %2900 = vmatprep.subr.bf16.mxu0 %v4021_v18  ;;  %v1813_v18 = vld [vmem:[#allocation9 + $0x1d] ss:$0 sm:$0xff] }
0x10d7   : > { %2901 = vmatpush1.bf16.msra.mxu0 %v4019_v19 }
0x10d8   : > { %2902 = vmatprep.subr.bf16.mxu0 %v4024_v20 }
0x10db   : > { %2903 = vmatpush1.bf16.msra.mxu0 %v4022_v21 }
0x10dc   : > { %2904 = vmatprep.subr.bf16.mxu0 %v4027_v23 }
0x10df   : > { %2905 = vmatpush1.bf16.msra.mxu0 %v4025_v24 }
0x10e0   : > { %2906 = vmatprep.subr.bf16.mxu0 %v4030_v25 }
0x10e3   : > { %2907 = vmatpush1.bf16.msra.mxu0 %v4028_v26 }
0x1161   : > { %v2771_v13 = vpop.xlane.xlu1 %2770 }
0x1162   : > { %v2772_v14 = vmul.f32 0.0078125, %v2771_v13 }
0x1164   : > { %v2773_v15 = vsub.f32 %v2769_v9, %v2772_v14 }
0x1166   : > { %v2774_v16 = vmul.f32 %v2773_v15, %v2773_v15 }
0x1168   : > { %2775 = vadd.xlane.f32.xlu0 %v2774_v16 }
0x11f5   : > { %v2776_v27 = vpop.xlane.xlu0 %2775 }
0x11f6   : > { %v2777_v29 = vmul.f32 0.0078125, %v2776_v27 }
0x11f8   : > { %v2778_v50 = vadd.f32 1e-12, %v2777_v29 }
0x11fa   : > { %4089 = vrsqrt.f32 %v2778_v50 }
0x1204   : > { %v4090_v30 = vpop.eup %4089 }
0x1205   : > { %v2780_v33 = vmul.f32 %v4090_v30, %v2773_v15 }
0x1207   : > { %v2781_v35 = vmul.f32 %v2780_v33, %v1814_v32 }
0x1209   : > { %v4930_v31 = vadd.f32 %v2781_v35, %v1815_v34  ;;  %v1816_v35 = vld [vmem:[#allocation9 + $0x30] ss:$0 sm:$0xff] }
0x120b   : > { %v2783_v36 = vpack.c.bf16 %v4930_v31, %v4930_v31 }
0x120d   : > { %2925 = vmatmul.mubr.bf16.vlgmr.msra.gmra.mrb[60].mxu0 %v2783_v36 }
0x12e0   : > { %v2926_v57 = vpop.f32.mrb[60].mxu0 }
0x12e1   : > { %v2927_v58 = vadd.f32 %v2926_v57, %v2805_v55  ;;  %v2928_v28 = vpop.f32.mrb[61].mxu0 }
0x12e2   : > { %v2929_v59 = vadd.f32 %v2928_v28, %v2809_v56  ;;  %v2930_v60 = vpop.f32.mrb[62].mxu0 }
0x12e3   : > { %v2933_v61 = vmul.f32 %v2927_v58, %v2927_v58  ;;  %v2931_v62 = vpop.f32.mrb[63].mxu0 }
0x12e4   : > { %v2934_v63 = vmul.f32 %v2929_v59, %v2929_v59 }
0x12e5   : > { %v2935_v1 = vmul.f32 %v2933_v61, %v2927_v58 }
0x12e6   : > { %v2936_v2 = vmul.f32 %v2934_v63, %v2929_v59 }
0x12e7   : > { %v2937_v5 = vmul.f32 0.044715, %v2935_v1 }
0x12e8   : > { %v2938_v8 = vmul.f32 0.044715, %v2936_v2 }
0x12e9   : > { %v2939_v9 = vadd.f32 %v2937_v5, %v2927_v58 }
0x12ea   : > { %v2940_v10 = vadd.f32 %v2938_v8, %v2929_v59 }
0x12eb   : > { %v2941_v3 = vmul.f32 0.7978846, %v2939_v9 }
0x12ec   : > { %v2942_v22 = vmul.f32 0.7978846, %v2940_v10 }
0x12ed   : > { %4091 = vtanh.f32 %v2941_v3 }
0x12ee   : > { %4093 = vtanh.f32 %v2942_v22 }
0x12f7   : > { %v4092_v6 = vpop.eup %4091 }
0x12f8   : > { %v4094_v4 = vpop.eup %4093  ;;  %v2945_v11 = vadd.f32 1.0, %v4092_v6 }
0x12f9   : > { %v2946_v12 = vadd.f32 1.0, %v4094_v4 }
0x12fa   : > { %v2947_v7 = vmul.f32 0.5, %v2945_v11 }
0x12fb   : > { %v2948_v13 = vmul.f32 0.5, %v2946_v12 }
0x12fc   : > { %v2949_v14 = vmul.f32 %v2947_v7, %v2927_v58 }
0x12fd   : > { %v2950_v15 = vmul.f32 %v2948_v13, %v2929_v59 }
0x12fe   : > { %v2951_v17 = vpack.c.bf16 %v2949_v14, %v2949_v14 }
0x12ff   : > { %v2952_v16 = vpack.c.bf16 %v2950_v15, %v2950_v15 }
0x1301   : > { %3114 = vmatprep.mubr.bf16.mxu1 %v2952_v16 }
0x1302   : > { %3115 = vmatmul.mubr.bf16.vlgmr.msra.gmra.mrb[60].mxu1 %v2951_v17 }
0x13d5   : > { %v3556_v42 = vpop.f32.mrb[60].mxu1 }
0x13d6   : > { %v3557_v19 = vpop.f32.mrb[61].mxu1 }
0x13d7   : > { %v3558_v20 = vadd.f32 %v3557_v19, %v3556_v42  ;;  %v3559_v21 = vpop.f32.mrb[62].mxu1 }
0x13d8   : > { %v3560_v23 = vpop.f32.mrb[63].mxu1 }
0x13d9   : > { %v3117_v24 = vadd.f32 %v3558_v20, %v1813_v18 }
0x13db   : > { %v3122_v25 = vadd.f32 %v3117_v24, %v4930_v31 }
0x13dd   : > { %3123 = vadd.xlane.f32.xlu0 %v3122_v25 }
0x146a   : > { %v3124_v26 = vpop.xlane.xlu0 %3123 }
0x146b   : > { %v3125_v27 = vmul.f32 0.0078125, %v3124_v26 }
0x146d   : > { %v3126_v29 = vsub.f32 %v3122_v25, %v3125_v27 }
0x146f   : > { %v3127_v50 = vmul.f32 %v3126_v29, %v3126_v29 }
0x1471   : > { %3128 = vadd.xlane.f32.xlu1 %v3127_v50 }
0x14fe   : > { %v3129_v30 = vpop.xlane.xlu1 %3128 }
0x14ff   : > { %v3130_v32 = vmul.f32 0.0078125, %v3129_v30 }
0x1501   : > { %v3131_v33 = vadd.f32 1e-12, %v3130_v32 }
0x1503   : > { %4095 = vrsqrt.f32 %v3131_v33 }
0x150d   : > { %v4096_v34 = vpop.eup %4095 }
0x150e   : > { %v3133_v36 = vmul.f32 %v4096_v34, %v3126_v29 }
0x1510   : > { %v3134_v31 = vmul.f32 %v3133_v36, %v1816_v35 }
0x1512   : > { %v3135_v38 = vadd.f32 %v3134_v31, %v1817_v37 }
0x1514   : > { %3136 = vst [vmem:[%s387_s18] sm:$0x1] %v3135_v38 }
0x1515   : > { %4316 = shalt.err (!%p4313_p3)
}
0x1516   : > { %s4317_s14 = scalar_lea.hbm %s4942_s24, 16  ;;  %s4321_s12 = scalar_lea.hbm %s4993_s9, 32 }
0x1517   : > { %p4318_p9 = scmp.ne.s32.totalorder %s4942_s24, %s4317_s14  ;;  %p4322_p1 = scmp.lt.u32.totalorder %s4942_s24, %s4993_s9 }
0x1518   : > { %p4323_p13 = scmp.lt.u32.totalorder %s4321_s12, %s4317_s14  ;;  %p4325_p6 = scmp.lt.u32.totalorder %s4317_s14, %s4942_s24 }
0x1519   : > { %p4319_p8 = pnand %p4318_p9, %p5019_p7 }
0x151a   : > { %p4324_p5 = por %p4323_p13, %p4322_p1 }
0x151b   : > { %p4320_p12 = pneg %p4319_p8 }
0x151c   : > { %p4326_p10 = por %p4325_p6, %p4324_p5 }
0x151e   : > { %p4327_p11 = pnand %p4326_p10, %p4320_p12 }
0x1520   : > { %4330 = shalt.err (!%p4327_p11)
}
0x1521   : > { %3790 = dma.vmem_to_hbm [thread:$0]  (%p5019_p7), %s4944_s15, 16, %s4942_s24, %s3138_s26  }
0x1522 PF: > { %p3832_p0 = scmp.ge.s32.totalorder %s4383_s22, 2  ;;  %s3162_s10 = sand.u32 1, %s4371_s19  }
0x1523   : > { %p5020_p2 = scmp.ne.s32.totalorder %s5005_s29, 0  ;;  %s3163_s17 = scalar_lea.sflag [#allocation6], %s3162_s10 }
0x1525   : > { %p3815_p4 = pnand %p3832_p0, %p5020_p2 }
0x1527   : > { %4366 = dma.done.wait (!%p3815_p4), %s3163_s17, 16  }
0x1528   : > { %4368 = vsyncadd (!%p3815_p4), %s3163_s17, 4294967280  ;;  %s5021_s22 = sld [smem:[#allocation24_spill]]  ;;  %s5022_s18 = sld [smem:[#allocation23_spill]] }
0x1529   : > { %s5023_s21 = sld [smem:[#allocation25_spill]]  ;;  %s5024_s19 = smov %s4375_s20 }
0x152e   : > { %p27_p3 = scmp.ge.s32.totalorder %s5021_s22, 4   ;;  %s5025_s20 = smov %s5022_s18 }
0x1530   :  { %29 = sbr.rel (!%p27_p3) target bundleno = 19 (0x13), region = 135 }
0x1537   :  { %3167 = vsyncpa [#allocation5], 1 }
0x1538   :  { %3169 = vsyncpa [#allocation5 + $0x1], 1 }
0x1539   :  { %3170 = vsyncpa [#allocation8], 1 }
0x153a   :  { %3171 = vsyncpa [#allocation11], 1 }
0x153b   :  { %3172 = vsyncpa [#allocation14], 1 }
0x153c   :  { %3173 = vsyncpa [#allocation6], 1 }
0x153d   :  { %3175 = vsyncpa [#allocation6 + $0x1], 1 }

</bundles_post_ra>
